<compile_context>
chip_gen: v7x
topology: tpu7x:2x2x1
jax: 0.10.0
libtpu: 0.0.40
codegen_flags: <defaults>
</compile_context>

<pallas_src>
import functools

import jax
import jax.numpy as jnp
from jax import lax
from jax.experimental import pallas as pl
from jax.experimental.pallas import tpu as pltpu


def _round_up(x, m):
    return ((x + m - 1) // m) * m


def _multi_embedding_kernel(idx_ref, w_ref, out_ref, *, n_pad_list, normalization):
    # idx_ref: (TB, T) int32 ; w_ref: (K_pad, D_pad) bf16/f32 ; out_ref: (TB, D_pad)
    tb = idx_ref.shape[0]
    compute_dtype = w_ref.dtype

    # Windowed one-hot: compare only inside each table's 128-padded row block, then
    # concatenate along the lane axis (all boundaries are 128-aligned).  Exactly one
    # bool->compute_dtype cast per element; no per-table float adds.
    pieces = []
    for t, n_pad in enumerate(n_pad_list):          # T is small -> static Python loop
        ids = idx_ref[:, t:t + 1]                                   # (TB, 1) int32
        iota = lax.broadcasted_iota(jnp.int32, (tb, n_pad), 1)      # (TB, n_pad)
        pieces.append((iota == ids).astype(compute_dtype))          # (TB, n_pad)
    onehot = pieces[0] if len(pieces) == 1 else jnp.concatenate(pieces, axis=1)

    # Single MXU matmul replaces T gathers + concatenate; f32 accumulation.
    out = jnp.dot(onehot, w_ref[...], preferred_element_type=jnp.float32)   # (TB, D_pad)

    if normalization == "l2":
        # torch F.normalize(p=2, dim=1, eps=1e-12); padded weight cols are exactly 0,
        # so they neither contribute to the norm nor become nonzero after scaling.
        sumsq = jnp.sum(out * out, axis=-1, keepdims=True)
        out = out * lax.rsqrt(jnp.maximum(sumsq, 1e-24))            # rsqrt -> EUP slot

    out_ref[...] = out.astype(out_ref.dtype)


def build_fused_weight(weight_list, weight_dtype=jnp.bfloat16):
    """Build the block-diagonal fused weight ONCE (cache across forward calls).

    Table t occupies rows [sum_{s<t} N_pad_s, + N_t) and cols [sum_{s<t} D_s, + D_t);
    each row block is padded to a multiple of 128 so per-table one-hot windows stay
    lane-aligned.  weight_dtype=bfloat16 is MXU-native (one-hot lookup -> only the bf16
    rounding of the stored weight is introduced); use float32 for exact torch parity.
    """
    n_list = [int(w.shape[0]) for w in weight_list]
    d_list = [int(w.shape[1]) for w in weight_list]
    n_pad_list = [_round_up(max(n, 1), 128) for n in n_list]
    k_pad = sum(n_pad_list)
    d_tot = sum(d_list)
    d_pad = _round_up(max(d_tot, 128), 128)

    w_fused = jnp.zeros((k_pad, d_pad), dtype=weight_dtype)
    roff, coff = 0, 0
    for w, n_pad, d in zip(weight_list, n_pad_list, d_list):
        w_fused = w_fused.at[roff:roff + w.shape[0], coff:coff + d].set(w.astype(weight_dtype))
        roff += n_pad
        coff += d

    meta = dict(n_pad_list=tuple(n_pad_list), d_tot=d_tot,
                k_pad=k_pad, d_pad=d_pad, num_tables=len(weight_list))
    return w_fused, meta


def _vmem_limit_bytes():
    # ~85% of per-core VMEM: ~108 MiB on v5e/v6e, ~54 MiB on v7x (leave Mosaic headroom).
    try:
        return int(pltpu.get_tpu_info().vmem_capacity_bytes * 0.85)
    except Exception:
        return 48 * 1024 * 1024


def multi_embedding_forward(indices, fused, normalization=None, *,
                            batch_tile=512, out_dtype=jnp.float32):
    """indices: (B, T) int; fused: (w_fused, meta) from build_fused_weight (preferred,
    cache it), or a raw list of per-table (N_t, D_t) weights (built on the fly).

    Returns (B, sum(D_t)) in out_dtype, optionally L2-normalized along the feature axis.
    """
    assert normalization in (None, "l2")
    if isinstance(fused, (list, tuple)) and not (len(fused) == 2 and isinstance(fused[1], dict)):
        fused = build_fused_weight(list(fused))
    w_fused, meta = fused

    B, T = indices.shape
    assert T == meta["num_tables"]
    n_pad_list = meta["n_pad_list"]
    k_pad, d_pad, d_tot = meta["k_pad"], meta["d_pad"], meta["d_tot"]

    # Batch tiling: 128-granular; pad B and strip afterwards.  Cap the tile so the grid
    # has >=2 steps for larger batches ("parallel" can then shard across TensorCores).
    b_ceil = _round_up(B, 128)
    bt = max(128, min(_round_up(int(batch_tile), 128), b_ceil))
    if b_ceil >= 256 and bt >= b_ceil:
        bt = max(128, (b_ceil // 2) // 128 * 128)
    b_pad = _round_up(B, bt)

    idx = indices.astype(jnp.int32)
    if b_pad != B:
        idx = jnp.pad(idx, ((0, b_pad - B), (0, 0)))   # index 0 is valid for every table

    grid = (b_pad // bt,)
    kernel = functools.partial(_multi_embedding_kernel,
                               n_pad_list=n_pad_list, normalization=normalization)

    cost = pl.CostEstimate(
        flops=2 * b_pad * k_pad * d_pad,
        transcendentals=b_pad if normalization == "l2" else 0,
        bytes_accessed=(idx.size * 4
                        + w_fused.size * jnp.dtype(w_fused.dtype).itemsize
                        + b_pad * d_pad * jnp.dtype(out_dtype).itemsize),
    )
    compiler_params = pltpu.CompilerParams(
        dimension_semantics=("parallel",),
        vmem_limit_bytes=_vmem_limit_bytes(),
    )

    def _call(single_buffer_weight):
        w_kwargs = dict(pipeline_mode=pl.Buffered(1)) if single_buffer_weight else {}
        return pl.pallas_call(
            kernel,
            out_shape=jax.ShapeDtypeStruct((b_pad, d_pad), out_dtype),
            grid_spec=pltpu.PrefetchScalarGridSpec(
                num_scalar_prefetch=0,
                grid=grid,
                in_specs=[
                    pl.BlockSpec((bt, T), lambda i: (i, 0)),                 # index tile
                    pl.BlockSpec((k_pad, d_pad), lambda i: (0, 0), **w_kwargs),  # resident weight
                ],
                out_specs=pl.BlockSpec((bt, d_pad), lambda i: (i, 0)),       # lane-dense output
            ),
            compiler_params=compiler_params,
            cost_estimate=cost,
        )(idx, w_fused)

    try:
        out = _call(True)
    except Exception:
        # pipeline_mode not supported on this pallas_call path in this jax version.
        out = _call(False)

    return out[:B, :d_tot]


def _xavier_uniform(key, n, d):
    # torch nn.init.xavier_uniform_ on an (n, d) weight: fan_in=d, fan_out=n, gain=1
    bound = (6.0 / (n + d)) ** 0.5
    return jax.random.uniform(key, (n, d), jnp.float32, minval=-bound, maxval=bound)


if __name__ == "__main__":
    # Module config (synthetic, deterministic): 3 embedding tables.
    n_embedding_list = [5, 7, 3]
    embedding_dim_list = [8, 16, 8]
    B = 16
    d_tot = sum(embedding_dim_list)

    key = jax.random.PRNGKey(0)
    keys = jax.random.split(key, len(n_embedding_list) + 1)
    weight_list = [
        _xavier_uniform(k, n, d)
        for k, n, d in zip(keys[:-1], n_embedding_list, embedding_dim_list)
    ]

    idx_keys = jax.random.split(keys[-1], len(n_embedding_list))
    indices = jnp.stack(
        [jax.random.randint(k, (B,), 0, n, dtype=jnp.int32)
         for k, n in zip(idx_keys, n_embedding_list)],
        axis=-1,
    )

    # Pure-JAX reference (torch semantics).
    def ref_forward(wl, norm):
        cat = jnp.concatenate(
            [jnp.take(w, indices[:, i], axis=0) for i, w in enumerate(wl)], axis=-1)
        if norm == "l2":
            cat = cat / jnp.maximum(
                jnp.sqrt(jnp.sum(cat * cat, axis=-1, keepdims=True)), 1e-12)
        return cat

    # Default bf16 fused weight (MXU-native).  The one-hot matmul reproduces the bf16
    # stored weights exactly, so compare against a reference on bf16-rounded weights.
    fused_bf16 = build_fused_weight(weight_list, weight_dtype=jnp.bfloat16)
    wl_q = [w.astype(jnp.bfloat16).astype(jnp.float32) for w in weight_list]

    out_none = jax.block_until_ready(
        multi_embedding_forward(indices, fused_bf16, normalization=None))
    assert out_none.shape == (B, d_tot)
    assert jnp.allclose(out_none, ref_forward(wl_q, None), atol=1e-5, rtol=1e-5), \
        "mismatch (bf16, normalization=None)"

    out_l2 = jax.block_until_ready(
        multi_embedding_forward(indices, fused_bf16, normalization="l2"))
    assert out_l2.shape == (B, d_tot)
    assert jnp.allclose(out_l2, ref_forward(wl_q, "l2"), atol=1e-5, rtol=1e-5), \
        "mismatch (bf16, normalization='l2')"

    # Opt-in exact torch parity: f32 fused weight.
    fused_f32 = build_fused_weight(weight_list, weight_dtype=jnp.float32)
    out_f32 = jax.block_until_ready(
        multi_embedding_forward(indices, fused_f32, normalization=None))
    assert jnp.allclose(out_f32, ref_forward(weight_list, None), atol=1e-5, rtol=1e-5), \
        "mismatch (f32, normalization=None)"

    print("KERNEL_OK")
</pallas_src>

<mosaic_0001>
module attributes {stable_mosaic.version = 11 : i64} {
  func.func @_multi_embedding_kernel(%arg0: i32, %arg1: memref<128x3xi32, #tpu.memory_space<vmem>>, %arg2: memref<384x128xbf16, #tpu.memory_space<vmem>>, %arg3: memref<128x128xf32, #tpu.memory_space<vmem>>) attributes {dimension_semantics = [#tpu.dimension_semantics<parallel>], iteration_bounds = array<i64: 1>, scalar_prefetch = 0 : i64, scratch_operands = 0 : i64, tpu.core_type = #tpu.core_type<tc>, window_params = [{transform_indices = @transform_0, window_bounds = array<i64: 128, 3>}, {pipeline_mode = #tpu.pipeline_mode<synchronous>, transform_indices = @transform_1, window_bounds = array<i64: 384, 128>}, {transform_indices = @transform_2, window_bounds = array<i64: 128, 128>}]} {
    %c0 = arith.constant 0 : index
    %c0_0 = arith.constant 0 : index
    %0 = vector.load %arg1[%c0, %c0_0] : memref<128x3xi32, #tpu.memory_space<vmem>>, vector<128x1xi32>
    %1 = tpu.iota {dimensions = array<i32: 1>} : vector<128x128xi32>
    %2 = vector.broadcast %0 : vector<128x1xi32> to vector<128x128xi32>
    %3 = arith.cmpi eq, %1, %2 : vector<128x128xi32>
    %4 = arith.extui %3 : vector<128x128xi1> to vector<128x128xi32>
    %5 = arith.sitofp %4 : vector<128x128xi32> to vector<128x128xf32>
    %6 = arith.truncf %5 : vector<128x128xf32> to vector<128x128xbf16>
    %c0_1 = arith.constant 0 : index
    %c1 = arith.constant 1 : index
    %7 = vector.load %arg1[%c0_1, %c1] : memref<128x3xi32, #tpu.memory_space<vmem>>, vector<128x1xi32>
    %8 = tpu.iota {dimensions = array<i32: 1>} : vector<128x128xi32>
    %9 = vector.broadcast %7 : vector<128x1xi32> to vector<128x128xi32>
    %10 = arith.cmpi eq, %8, %9 : vector<128x128xi32>
    %11 = arith.extui %10 : vector<128x128xi1> to vector<128x128xi32>
    %12 = arith.sitofp %11 : vector<128x128xi32> to vector<128x128xf32>
    %13 = arith.truncf %12 : vector<128x128xf32> to vector<128x128xbf16>
    %c0_2 = arith.constant 0 : index
    %c2 = arith.constant 2 : index
    %14 = vector.load %arg1[%c0_2, %c2] : memref<128x3xi32, #tpu.memory_space<vmem>>, vector<128x1xi32>
    %15 = tpu.iota {dimensions = array<i32: 1>} : vector<128x128xi32>
    %16 = vector.broadcast %14 : vector<128x1xi32> to vector<128x128xi32>
    %17 = arith.cmpi eq, %15, %16 : vector<128x128xi32>
    %18 = arith.extui %17 : vector<128x128xi1> to vector<128x128xi32>
    %19 = arith.sitofp %18 : vector<128x128xi32> to vector<128x128xf32>
    %20 = arith.truncf %19 : vector<128x128xf32> to vector<128x128xbf16>
    %21 = tpu.concatenate %6, %13, %20 in 1 : vector<128x128xbf16>, vector<128x128xbf16>, vector<128x128xbf16> -> vector<128x384xbf16>
    %c0_3 = arith.constant 0 : index
    %c0_4 = arith.constant 0 : index
    %22 = vector.load %arg2[%c0_3, %c0_4] : memref<384x128xbf16, #tpu.memory_space<vmem>>, vector<384x128xbf16>
    %cst = arith.constant dense<0.000000e+00> : vector<128x128xf32>
    %23 = tpu.matmul %21, %22, %cst {dimension_numbers = #tpu.dot_dimension_numbers<[1], [0], [0], [1], [0, 0, 1, 1], [], []>} : vector<128x384xbf16>, vector<384x128xbf16>, vector<128x128xf32> -> vector<128x128xf32>
    %c0_5 = arith.constant 0 : index
    %c0_6 = arith.constant 0 : index
    %24 = vector.load %arg3[%c0_5, %c0_6] : memref<128x128xf32, #tpu.memory_space<vmem>>, vector<128x128xf32>
    tpu.vector_store %arg3[%c0_5, %c0_6], %23 {strides = array<i32>} : memref<128x128xf32, #tpu.memory_space<vmem>>, vector<128x128xf32>,
    return
  }
  func.func @transform_0(%arg0: i32) -> (i32, i32) {
    %c0_i32 = arith.constant 0 : i32
    %c0_i32_0 = arith.constant 0 : i32
    return %arg0, %c0_i32 : i32, i32
  }
  func.func @transform_1(%arg0: i32) -> (i32, i32) {
    %c0_i32 = arith.constant 0 : i32
    %c0_i32_0 = arith.constant 0 : i32
    %c0_i32_1 = arith.constant 0 : i32
    return %c0_i32, %c0_i32_0 : i32, i32
  }
  func.func @transform_2(%arg0: i32) -> (i32, i32) {
    %c0_i32 = arith.constant 0 : i32
    %c0_i32_0 = arith.constant 0 : i32
    return %arg0, %c0_i32 : i32, i32
  }
}

module attributes {stable_mosaic.version = 11 : i64} {
  func.func @_multi_embedding_kernel(%arg0: i32, %arg1: memref<128x3xi32, #tpu.memory_space<vmem>>, %arg2: memref<384x128xbf16, #tpu.memory_space<vmem>>, %arg3: memref<128x128xf32, #tpu.memory_space<vmem>>) attributes {dimension_semantics = [#tpu.dimension_semantics<parallel>], iteration_bounds = array<i64: 1>, scalar_prefetch = 0 : i64, scratch_operands = 0 : i64, tpu.core_type = #tpu.core_type<tc>, window_params = [{transform_indices = @transform_0, window_bounds = array<i64: 128, 3>}, {pipeline_mode = #tpu.pipeline_mode<synchronous>, transform_indices = @transform_1, window_bounds = array<i64: 384, 128>}, {transform_indices = @transform_2, window_bounds = array<i64: 128, 128>}]} {
    %c0 = arith.constant 0 : index
    %c0_0 = arith.constant 0 : index
    %0 = vector.load %arg1[%c0, %c0_0] : memref<128x3xi32, #tpu.memory_space<vmem>>, vector<128x1xi32>
    %1 = tpu.iota {dimensions = array<i32: 1>} : vector<128x128xi32>
    %2 = vector.broadcast %0 : vector<128x1xi32> to vector<128x128xi32>
    %3 = arith.cmpi eq, %1, %2 : vector<128x128xi32>
    %4 = arith.extui %3 : vector<128x128xi1> to vector<128x128xi32>
    %5 = arith.sitofp %4 : vector<128x128xi32> to vector<128x128xf32>
    %6 = arith.truncf %5 : vector<128x128xf32> to vector<128x128xbf16>
    %c0_1 = arith.constant 0 : index
    %c1 = arith.constant 1 : index
    %7 = vector.load %arg1[%c0_1, %c1] : memref<128x3xi32, #tpu.memory_space<vmem>>, vector<128x1xi32>
    %8 = tpu.iota {dimensions = array<i32: 1>} : vector<128x128xi32>
    %9 = vector.broadcast %7 : vector<128x1xi32> to vector<128x128xi32>
    %10 = arith.cmpi eq, %8, %9 : vector<128x128xi32>
    %11 = arith.extui %10 : vector<128x128xi1> to vector<128x128xi32>
    %12 = arith.sitofp %11 : vector<128x128xi32> to vector<128x128xf32>
    %13 = arith.truncf %12 : vector<128x128xf32> to vector<128x128xbf16>
    %c0_2 = arith.constant 0 : index
    %c2 = arith.constant 2 : index
    %14 = vector.load %arg1[%c0_2, %c2] : memref<128x3xi32, #tpu.memory_space<vmem>>, vector<128x1xi32>
    %15 = tpu.iota {dimensions = array<i32: 1>} : vector<128x128xi32>
    %16 = vector.broadcast %14 : vector<128x1xi32> to vector<128x128xi32>
    %17 = arith.cmpi eq, %15, %16 : vector<128x128xi32>
    %18 = arith.extui %17 : vector<128x128xi1> to vector<128x128xi32>
    %19 = arith.sitofp %18 : vector<128x128xi32> to vector<128x128xf32>
    %20 = arith.truncf %19 : vector<128x128xf32> to vector<128x128xbf16>
    %21 = tpu.concatenate %6, %13, %20 in 1 : vector<128x128xbf16>, vector<128x128xbf16>, vector<128x128xbf16> -> vector<128x384xbf16>
    %c0_3 = arith.constant 0 : index
    %c0_4 = arith.constant 0 : index
    %22 = vector.load %arg2[%c0_3, %c0_4] : memref<384x128xbf16, #tpu.memory_space<vmem>>, vector<384x128xbf16>
    %cst = arith.constant dense<0.000000e+00> : vector<128x128xf32>
    %23 = tpu.matmul %21, %22, %cst {dimension_numbers = #tpu.dot_dimension_numbers<[1], [0], [0], [1], [0, 0, 1, 1], [], []>} : vector<128x384xbf16>, vector<384x128xbf16>, vector<128x128xf32> -> vector<128x128xf32>
    %c0_5 = arith.constant 0 : index
    %c0_6 = arith.constant 0 : index
    %24 = vector.load %arg3[%c0_5, %c0_6] : memref<128x128xf32, #tpu.memory_space<vmem>>, vector<128x128xf32>
    tpu.vector_store %arg3[%c0_5, %c0_6], %23 {strides = array<i32>} : memref<128x128xf32, #tpu.memory_space<vmem>>, vector<128x128xf32>,
    return
  }
  func.func @transform_0(%arg0: i32) -> (i32, i32) {
    %c0_i32 = arith.constant 0 : i32
    %c0_i32_0 = arith.constant 0 : i32
    return %arg0, %c0_i32 : i32, i32
  }
  func.func @transform_1(%arg0: i32) -> (i32, i32) {
    %c0_i32 = arith.constant 0 : i32
    %c0_i32_0 = arith.constant 0 : i32
    %c0_i32_1 = arith.constant 0 : i32
    return %c0_i32, %c0_i32_0 : i32, i32
  }
  func.func @transform_2(%arg0: i32) -> (i32, i32) {
    %c0_i32 = arith.constant 0 : i32
    %c0_i32_0 = arith.constant 0 : i32
    return %arg0, %c0_i32 : i32, i32
  }
}

</mosaic_0001>

<bundles_post_ra>
// kernel: tpu_custom_call.1
= control target key start
LH: loop header
LB: loop body
LE: loop exit
PB: predicated region body
PF: predicated region fallthrough
CT: control target
= control target key end

     0   :  { %7 = vsyncpa [#allocation3], 0  ;;  %s1353_s0 = inlined_call_operand.vmem [shape: s32[128,3], index: 0, kind: input, shape index: {}]   ;;  %s1354_s1 = inlined_call_operand.hbm [shape: bf16[384,128], index: 1, kind: input, shape index: {}]   ;;  %s1355_s2 = inlined_call_operand.hbm [shape: f32[128,128], index: 2, kind: output, shape index: {}]  }
   0x1   :  { %8 = vsyncpa [#allocation4], 0  ;;  %s1112_s9 = smov [#allocation2]   ;;  %s1064_s13 = scalar_lea.hbm %s1354_s1, 3072 }
   0x2   :  { %s16_s10 = sshll.u32 %s1112_s9, 4  ;;  %p1065_p0 = scmp.ne.s32.totalorder %s1354_s1, %s1064_s13  ;;  %s17_s10 = int_to_ptr.vmem [resolvable:$true] %s16_s10 }
   0x3   :  { %p1068_p1 = scmp.lt.u32.totalorder %s1064_s13, %s1354_s1 }
   0x5   :  { %p1070_p2 = pnand %p1068_p1, %p1065_p0 }
   0x7   :  { %1073 = shalt.err (!%p1070_p2)
}
   0x8   :  { %s1074_s18 = scalar_lea.vmem %s17_s10, 3072  ;;  %p1079_p4 = scmp.lt.s32.totalorder %s17_s10, %s17_s10 }
   0x9   :  { %p1075_p3 = scmp.ne.s32.totalorder %s17_s10, %s1074_s18  ;;  %p1080_p5 = scmp.lt.s32.totalorder %s1074_s18, %s1074_s18 }
   0xb   :  { %p1081_p6 = por %p1080_p5, %p1079_p4 }
   0xd   :  { %p1082_p7 = pnand %p1081_p6, %p1075_p3 }
   0xf   :  { %1085 = shalt.err (!%p1082_p7)
}
  0x10   :  { %s1113_s19 = smov 64   ;;  %s1114_s20 = smov 4  }
  0x11   :  { %22 = dma.hbm_to_vmem [thread:$0]  %s1354_s1, 3072, %s17_s10, [#allocation3], %s1113_s19, %s1113_s19, %s1114_s20  }
  0x12   :  { %1108 = dma.done.wait [#allocation3], 3072  }
  0x13   :  { %1109 = vsyncadd [#allocation3], 4294964224  ;;  %v1115_v0 = vmov 0   ;;  %v1154_v1 = vld [vmem:[%s1353_s0 + $0x10] sm:$0xff]  ;;  %v1159_v2 = vld [vmem:[%s1353_s0] sm:$0xff]  ;;  %v1116_v9 = vmov 1   ;;  %v43_v47 = vlaneseq }
  0x14   :  { %1020 = vset.pattern.permute.xlu0 %v1115_v0  ;;  %1018 = vset.pattern.permute.xlu1 %v1115_v0  ;;  %v1166_v3 = vld [vmem:[%s1353_s0 + $0x30] sm:$0xff]  ;;  %v1171_v4 = vld [vmem:[%s1353_s0 + $0x8] sm:$0xff]  ;;  %v1040_v5 = vld [vmem:[#allocation2 + $0x40] sm:$0xff]   ;;  %v1117_v35 = vmov 2   ;;  %v1118_v53 = vmov 1.0|1.0  }
  0x15   :  { %52 = vperm.xlu0 %1020, %v1154_v1   ;;  %46 = vperm.xlu1 %1018, %v1159_v2   ;;  %v1178_v6 = vld [vmem:[%s1353_s0 + $0x18] sm:$0xff]  ;;  %v1041_v7 = vld [vmem:[#allocation2] sm:$0xff]   ;;  %v1042_v8 = vld [vmem:[#allocation2 + $0x48] sm:$0xff]   ;;  %v1264_v50 = vand.u32 127, %v43_v47 }
  0x16   :  { %896 = vmatprep.subr.bf16.mxu0 %v1040_v5  ;;  %v1043_v10 = vld [vmem:[#allocation2 + $0x8] sm:$0xff]   ;;  %v1044_v11 = vld [vmem:[#allocation2 + $0x50] sm:$0xff]   ;;  %v1046_v13 = vld [vmem:[#allocation2 + $0x58] sm:$0xff]  }
  0x17   :  { %897 = vmatpush3.bf16.msra.mxu0 %v1041_v7  ;;  %v1045_v12 = vld [vmem:[#allocation2 + $0x10] sm:$0xff]   ;;  %v1190_v14 = vld [vmem:[%s1353_s0 + $0x20] sm:$0xff]  ;;  %v1196_v15 = vld [vmem:[%s1353_s0 + $0x28] sm:$0xff] }
  0x18   :  { %898 = vmatprep.subr.bf16.mxu0 %v1042_v8  ;;  %v1047_v16 = vld [vmem:[#allocation2 + $0x18] sm:$0xff]   ;;  %v1048_v17 = vld [vmem:[#allocation2 + $0x60] sm:$0xff]   ;;  %v1050_v19 = vld [vmem:[#allocation2 + $0x68] sm:$0xff]  }
  0x19   :  { %64 = vperm.xlu0 %1020, %v1166_v3   ;;  %49 = vperm.xlu1 %1018, %v1171_v4   ;;  %v1049_v18 = vld [vmem:[#allocation2 + $0x20] sm:$0xff]   ;;  %v1207_v20 = vld [vmem:[%s1353_s0 + $0x48] sm:$0xff]  ;;  %v1052_v22 = vld [vmem:[#allocation2 + $0x70] sm:$0xff]  }
  0x1a   :  { %v1051_v21 = vld [vmem:[#allocation2 + $0x28] sm:$0xff]   ;;  %v1056_v23 = vld [vmem:[#allocation2 + $0x80] sm:$0xff]   ;;  %v34_v24 = vld [vmem:[%s1353_s0 + $0x38] sm:$0xff] }
  0x1b   :  { %899 = vmatpush3.bf16.msra.mxu0 %v1043_v10  ;;  %v1217_v25 = vld [vmem:[%s1353_s0 + $0x58] sm:$0xff]  ;;  %v1053_v26 = vld [vmem:[#allocation2 + $0x30] sm:$0xff]   ;;  %976 = vmatprep.subr.bf16.mxu1 %v1056_v23  ;;  %v1057_v28 = vld [vmem:[#allocation2 + $0x88] sm:$0xff]  }
  0x1c   :  { %900 = vmatprep.subr.bf16.mxu0 %v1044_v11  ;;  %v1054_v27 = vld [vmem:[#allocation2 + $0x78] sm:$0xff]   ;;  %977 = vmatpush3.bf16.msra.mxu1 %v1056_v23  ;;  %v1224_v29 = vld [vmem:[%s1353_s0 + $0x68] sm:$0xff]  ;;  %v1058_v31 = vld [vmem:[#allocation2 + $0x90] sm:$0xff]  }
  0x1d   :  { %1025 = vset.pattern.permute.xlu0 %v1116_v9  ;;  %1019 = vset.pattern.permute.xlu1 %v1116_v9  ;;  %v1055_v30 = vld [vmem:[#allocation2 + $0x38] sm:$0xff]   ;;  %v35_v33 = vld [vmem:[%s1353_s0 + $0x40] sm:$0xff]  ;;  %v1061_v37 = vld [vmem:[#allocation2 + $0xa8] sm:$0xff]  }
  0x1e   :  { %150 = vperm.xlu0 %1025, %v1159_v2   ;;  %159 = vperm.xlu1 %1019, %v1178_v6   ;;  %v42_v32 = vld [vmem:[%s1353_s0 + $0x78] sm:$0xff]  ;;  %v1060_v36 = vld [vmem:[#allocation2 + $0xa0] sm:$0xff]   ;;  %v1062_v38 = vld [vmem:[#allocation2 + $0xb0] sm:$0xff]  }
  0x1f   :  { %901 = vmatpush3.bf16.msra.mxu0 %v1045_v12  ;;  %978 = vmatprep.subr.bf16.mxu1 %v1057_v28  ;;  %v1059_v34 = vld [vmem:[#allocation2 + $0x98] sm:$0xff]   ;;  %v37_v40 = vld [vmem:[%s1353_s0 + $0x50] sm:$0xff]  ;;  %v39_v41 = vld [vmem:[%s1353_s0 + $0x60] sm:$0xff] }
  0x20   :  { %902 = vmatprep.subr.bf16.mxu0 %v1046_v13  ;;  %979 = vmatpush3.bf16.msra.mxu1 %v1057_v28  ;;  %v1063_v39 = vld [vmem:[#allocation2 + $0xb8] sm:$0xff]   ;;  %v41_v42 = vld [vmem:[%s1353_s0 + $0x70] sm:$0xff]  ;;  %s1119_s0 = smov [#allocation5]  }
  0x21   :  { %980 = vmatprep.subr.bf16.mxu1 %v1058_v31  ;;  %s764_s26 = sshll.u32 %s1119_s0, 4  ;;  %s765_s26 = int_to_ptr.vmem [resolvable:$true] %s764_s26 }
  0x22   :  { %153 = vperm.xlu0 %1025, %v1171_v4   ;;  %1021 = vset.pattern.permute.xlu1 %v1115_v0  ;;  %s1086_s1 = scalar_lea.vmem %s765_s26, 2048  ;;  %p1091_p9 = scmp.lt.s32.totalorder %s765_s26, %s765_s26 }
  0x23   :  { %55 = vperm.xlu1 %1021, %v1178_v6   ;;  %903 = vmatpush3.bf16.msra.mxu0 %v1047_v16  ;;  %p1087_p8 = scmp.ne.s32.totalorder %s765_s26, %s1086_s1  ;;  %p1092_p10 = scmp.lt.s32.totalorder %s1086_s1, %s1086_s1 }
  0x24   :  { %904 = vmatprep.subr.bf16.mxu0 %v1048_v17  ;;  %981 = vmatpush3.bf16.msra.mxu1 %v1058_v31 }
  0x25   :  { %982 = vmatprep.subr.bf16.mxu1 %v1059_v34  ;;  %p1093_p11 = por %p1092_p10, %p1091_p9 }
  0x26   :  { %156 = vperm.xlu0 %1025, %v1154_v1  }
  0x27   :  { %1022 = vset.pattern.permute.xlu1 %v1116_v9  ;;  %905 = vmatpush3.bf16.msra.mxu0 %v1049_v18  ;;  %p1094_p12 = pnand %p1093_p11, %p1087_p8 }
  0x28   :  { %162 = vperm.xlu1 %1022, %v1190_v14   ;;  %906 = vmatprep.subr.bf16.mxu0 %v1050_v19 }
  0x29   :  { %983 = vmatpush3.bf16.msra.mxu1 %v1059_v34 }
  0x2a   :  { %165 = vperm.xlu0 %1025, %v1196_v15   ;;  %984 = vmatprep.subr.bf16.mxu1 %v1060_v36 }
  0x2b   :  { %907 = vmatpush3.bf16.msra.mxu0 %v1051_v21 }
  0x2c   :  { %1023 = vset.pattern.permute.xlu1 %v1115_v0  ;;  %908 = vmatprep.subr.bf16.mxu0 %v1052_v22 }
  0x2d   :  { %58 = vperm.xlu1 %1023, %v1190_v14   ;;  %985 = vmatpush3.bf16.msra.mxu1 %v1060_v36 }
  0x2e   :  { %168 = vperm.xlu0 %1025, %v1166_v3   ;;  %986 = vmatprep.subr.bf16.mxu1 %v1061_v37 }
  0x2f   :  { %909 = vmatpush3.bf16.msra.mxu0 %v1053_v26 }
  0x30   :  { %910 = vmatprep.subr.bf16.mxu0 %v1054_v27 }
  0x31   :  { %61 = vperm.xlu1 %1023, %v1196_v15   ;;  %987 = vmatpush3.bf16.msra.mxu1 %v1061_v37 }
  0x32   :  { %177 = vperm.xlu0 %1025, %v1207_v20   ;;  %988 = vmatprep.subr.bf16.mxu1 %v1062_v38 }
  0x33   :  { %911 = vmatpush3.bf16.msra.mxu0 %v1055_v30 }
  0x35   :  { %1024 = vset.pattern.permute.xlu1 %v1116_v9  ;;  %989 = vmatpush3.bf16.msra.mxu1 %v1062_v38 }
  0x36   :  { %171 = vperm.xlu1 %1024, %v34_v24   ;;  %183 = vperm.xlu0 %1025, %v1217_v25  }
  0x37   :  { %990 = vmatprep.subr.bf16.mxu1 %v1063_v39 }
  0x39   :  { %991 = vmatpush3.bf16.msra.mxu1 %v1063_v39 }
  0x3a   :  { %1026 = vset.pattern.permute.xlu1 %v1115_v0  ;;  %189 = vperm.xlu0 %1025, %v1224_v29  }
  0x3b   :  { %67 = vperm.xlu1 %1026, %v34_v24  }
  0x3e   :  { %195 = vperm.xlu0 %1025, %v42_v32  }
  0x3f   :  { %1027 = vset.pattern.permute.xlu1 %v1116_v9 }
  0x40   :  { %174 = vperm.xlu1 %1027, %v35_v33  }
  0x42   :  { %1037 = vset.pattern.permute.xlu0 %v1117_v35 }
  0x43   :  { %254 = vperm.xlu0 %1037, %v1159_v2  }
  0x44   :  { %1028 = vset.pattern.permute.xlu1 %v1115_v0 }
  0x45   :  { %70 = vperm.xlu1 %1028, %v35_v33  }
  0x47   :  { %263 = vperm.xlu0 %1037, %v1178_v6  }
  0x49   :  { %73 = vperm.xlu1 %1028, %v1207_v20  }
  0x4b   :  { %266 = vperm.xlu0 %1037, %v1190_v14  }
  0x4d   :  { %1029 = vset.pattern.permute.xlu1 %v1117_v35 }
  0x4e   :  { %257 = vperm.xlu1 %1029, %v1171_v4  }
  0x4f   :  { %275 = vperm.xlu0 %1037, %v34_v24  }
  0x52   :  { %260 = vperm.xlu1 %1029, %v1154_v1  }
  0x53   :  { %278 = vperm.xlu0 %1037, %v35_v33  }
  0x56   :  { %1030 = vset.pattern.permute.xlu1 %v1116_v9 }
  0x57   :  { %180 = vperm.xlu1 %1030, %v37_v40   ;;  %287 = vperm.xlu0 %1037, %v1217_v25  }
  0x5b   :  { %1031 = vset.pattern.permute.xlu1 %v1115_v0  ;;  %290 = vperm.xlu0 %1037, %v39_v41  }
  0x5c   :  { %76 = vperm.xlu1 %1031, %v37_v40  }
  0x5f   :  { %299 = vperm.xlu0 %1037, %v42_v32  }
  0x60   :  { %79 = vperm.xlu1 %1031, %v1217_v25  }
  0x64   :  { %1032 = vset.pattern.permute.xlu1 %v1117_v35 }
  0x65   :  { %269 = vperm.xlu1 %1032, %v1196_v15  }
  0x69   :  { %272 = vperm.xlu1 %1032, %v1166_v3  }
  0x6d   :  { %1033 = vset.pattern.permute.xlu1 %v1116_v9 }
  0x6e   :  { %186 = vperm.xlu1 %1033, %v39_v41  }
  0x72   :  { %1034 = vset.pattern.permute.xlu1 %v1115_v0 }
  0x73   :  { %82 = vperm.xlu1 %1034, %v39_v41  }
  0x77   :  { %85 = vperm.xlu1 %1034, %v1224_v29  }
  0x7b   :  { %1035 = vset.pattern.permute.xlu1 %v1117_v35 }
  0x7c   :  { %281 = vperm.xlu1 %1035, %v1207_v20  }
  0x80   :  { %284 = vperm.xlu1 %1035, %v37_v40  }
  0x84   :  { %1036 = vset.pattern.permute.xlu1 %v1116_v9 }
  0x85   :  { %192 = vperm.xlu1 %1036, %v41_v42  }
  0x89   :  { %1038 = vset.pattern.permute.xlu1 %v1115_v0 }
  0x8a   :  { %88 = vperm.xlu1 %1038, %v41_v42  }
  0x8e   :  { %91 = vperm.xlu1 %1038, %v42_v32  }
  0x92   :  { %1039 = vset.pattern.permute.xlu1 %v1117_v35 }
  0x93   :  { %293 = vperm.xlu1 %1039, %v1224_v29  }
  0x94   :  { %v47_v43 = vpop.permute.xlu1 %46  ;;  %v53_v44 = vpop.permute.xlu0 %52 }
  0x95   :  { %vm93_vm3 = vcmp.eq.s32.totalorder %v1264_v50, %v47_v43  ;;  %vm95_vm9 = vcmp.eq.s32.totalorder %v1264_v50, %v53_v44 }
  0x97   :  { %296 = vperm.xlu1 %1039, %v41_v42  }
  0x98   :  { %v50_v45 = vpop.permute.xlu1 %49  ;;  %v65_v46 = vpop.permute.xlu0 %64 }
  0x99   :  { %vm94_vm1 = vcmp.eq.s32.totalorder %v1264_v50, %v50_v45 }
  0x9a   :  { %vm850_vm5 = vmpackc.low %vm94_vm1, %vm93_vm3 }
  0x9d   :  { %v151_v48 = vpop.permute.xlu0 %150  ;;  %v160_v49 = vpop.permute.xlu1 %159 }
  0x9e   :  { %vm197_vm0 = vcmp.eq.s32.totalorder %v1264_v50, %v151_v48  ;;  %vm200_vm6 = vcmp.eq.s32.totalorder %v1264_v50, %v160_v49 }
  0xa1   :  { %v154_v51 = vpop.permute.xlu0 %153 }
  0xa2   :  { %vm198_vm2 = vcmp.eq.s32.totalorder %v1264_v50, %v154_v51  ;;  %v56_v52 = vpop.permute.xlu1 %55 }
  0xa3   :  { %vm848_vm4 = vmpackc.low %vm198_vm2, %vm197_vm0  ;;  %vm96_vm10 = vcmp.eq.s32.totalorder %v1264_v50, %v56_v52 }
  0xa4   :  { %849 = vmatprep.mubr.msk.bf16.mxu0 %vm848_vm4, %v1118_v53  ;;  %vm854_vm12 = vmpackc.low %vm96_vm10, %vm95_vm9 }
  0xa5   :  { %v157_v54 = vpop.permute.xlu0 %156  ;;  %851 = vmatmul.mubr.msk.bf16.vlgmr.msra.gmra.mrb[0].mxu0 %vm850_vm5, %v1118_v53  ;;  %vm99_vm5 = vcmp.eq.s32.totalorder %v1264_v50, %v65_v46 }
  0xa6   :  { %vm199_vm7 = vcmp.eq.s32.totalorder %v1264_v50, %v157_v54 }
  0xa7   :  { %vm852_vm8 = vmpackc.low %vm200_vm6, %vm199_vm7  ;;  %v163_v55 = vpop.permute.xlu1 %162 }
  0xa8   :  { %853 = vmatprep.mubr.msk.bf16.mxu0 %vm852_vm8, %v1118_v53  ;;  %vm201_vm13 = vcmp.eq.s32.totalorder %v1264_v50, %v163_v55 }
  0xa9   :  { %v166_v56 = vpop.permute.xlu0 %165 }
  0xaa   :  { %vm202_vm11 = vcmp.eq.s32.totalorder %v1264_v50, %v166_v56 }
  0xab   :  { %vm856_vm14 = vmpackc.low %vm202_vm11, %vm201_vm13 }
  0xac   :  { %v59_v57 = vpop.permute.xlu1 %58 }
  0xad   :  { %855 = vmatmul.mubr.msk.bf16.gmra.mrb[4].mxu0 %vm854_vm12, %v1118_v53  ;;  %v169_v58 = vpop.permute.xlu0 %168  ;;  %vm97_vm0 = vcmp.eq.s32.totalorder %v1264_v50, %v59_v57 }
  0xae   :  { %857 = vmatprep.mubr.msk.bf16.mxu0 %vm856_vm14, %v1118_v53  ;;  %vm203_vm2 = vcmp.eq.s32.totalorder %v1264_v50, %v169_v58 }
  0xb0   :  { %v62_v59 = vpop.permute.xlu1 %61 }
  0xb1   :  { %vm98_vm15 = vcmp.eq.s32.totalorder %v1264_v50, %v62_v59  ;;  %v178_v60 = vpop.permute.xlu0 %177 }
  0xb2   :  { %vm858_vm1 = vmpackc.low %vm98_vm15, %vm97_vm0  ;;  %vm206_vm8 = vcmp.eq.s32.totalorder %v1264_v50, %v178_v60 }
  0xb5   :  { %859 = vmatmul.mubr.msk.bf16.gmra.mrb[8].mxu0 %vm858_vm1, %v1118_v53  ;;  %v172_v61 = vpop.permute.xlu1 %171  ;;  %v184_v62 = vpop.permute.xlu0 %183 }
  0xb6   :  { %vm204_vm3 = vcmp.eq.s32.totalorder %v1264_v50, %v172_v61 }
  0xb7   :  { %vm860_vm4 = vmpackc.low %vm204_vm3, %vm203_vm2 }
  0xb8   :  { %861 = vmatprep.mubr.msk.bf16.mxu0 %vm860_vm4, %v1118_v53  ;;  %vm208_vm4 = vcmp.eq.s32.totalorder %v1264_v50, %v184_v62 }
  0xb9   :  { %v190_v0 = vpop.permute.xlu0 %189 }
  0xba   :  { %v68_v63 = vpop.permute.xlu1 %67 }
  0xbb   :  { %vm100_vm6 = vcmp.eq.s32.totalorder %v1264_v50, %v68_v63 }
  0xbc   :  { %vm862_vm7 = vmpackc.low %vm100_vm6, %vm99_vm5 }
  0xbd   :  { %863 = vmatmul.mubr.msk.bf16.gmra.mrb[12].mxu0 %vm862_vm7, %v1118_v53  ;;  %v1292_v2 = vpop.permute.xlu0 %195 }
  0xbf   :  { %v175_v1 = vpop.permute.xlu1 %174 }
  0xc0   :  { %vm205_vm9 = vcmp.eq.s32.totalorder %v1264_v50, %v175_v1 }
  0xc1   :  { %vm864_vm10 = vmpackc.low %vm206_vm8, %vm205_vm9 }
  0xc2   :  { %865 = vmatprep.mubr.msk.bf16.mxu0 %vm864_vm10, %v1118_v53  ;;  %v255_v4 = vpop.permute.xlu0 %254 }
  0xc3   :  { %vm301_vm14 = vcmp.eq.s32.totalorder %v1264_v50, %v255_v4 }
  0xc4   :  { %v71_v3 = vpop.permute.xlu1 %70 }
  0xc5   :  { %vm101_vm11 = vcmp.eq.s32.totalorder %v1264_v50, %v71_v3 }
  0xc6   :  { %v264_v7 = vpop.permute.xlu0 %263 }
  0xc7   :  { %vm304_vm1 = vcmp.eq.s32.totalorder %v1264_v50, %v264_v7 }
  0xc8   :  { %v74_v5 = vpop.permute.xlu1 %73 }
  0xc9   :  { %vm102_vm12 = vcmp.eq.s32.totalorder %v1264_v50, %v74_v5 }
  0xca   :  { %vm866_vm13 = vmpackc.low %vm102_vm12, %vm101_vm11  ;;  %v267_v11 = vpop.permute.xlu0 %266 }
  0xcb   :  { %867 = vmatmul.mubr.msk.bf16.gmra.mrb[16].mxu0 %vm866_vm13, %v1118_v53  ;;  %vm305_vm10 = vcmp.eq.s32.totalorder %v1264_v50, %v267_v11 }
  0xcd   :  { %v258_v6 = vpop.permute.xlu1 %257 }
  0xce   :  { %vm302_vm15 = vcmp.eq.s32.totalorder %v1264_v50, %v258_v6  ;;  %v276_v14 = vpop.permute.xlu0 %275 }
  0xcf   :  { %vm880_vm0 = vmpackc.low %vm302_vm15, %vm301_vm14  ;;  %vm308_vm13 = vcmp.eq.s32.totalorder %v1264_v50, %v276_v14 }
  0xd0   :  { %992 = vmatprep.mubr.msk.bf16.mxu1 %vm880_vm0, %v1118_v53  ;;  %vm210_vm0 = vcmp.eq.s32.totalorder %v1264_v50, %v190_v0 }
  0xd1   :  { %v261_v8 = vpop.permute.xlu1 %260 }
  0xd2   :  { %vm303_vm2 = vcmp.eq.s32.totalorder %v1264_v50, %v261_v8  ;;  %v279_v19 = vpop.permute.xlu0 %278 }
  0xd3   :  { %vm882_vm3 = vmpackc.low %vm304_vm1, %vm303_vm2 }
  0xd4   :  { %993 = vmatmul.mubr.msk.bf16.vlgmr.msra.gmra.mrb[0].mxu1 %vm882_vm3, %v1118_v53 }
  0xd6   :  { %v181_v9 = vpop.permute.xlu1 %180  ;;  %v288_v21 = vpop.permute.xlu0 %287 }
  0xd7   :  { %vm207_vm5 = vcmp.eq.s32.totalorder %v1264_v50, %v181_v9 }
  0xd8   :  { %vm868_vm6 = vmpackc.low %vm208_vm4, %vm207_vm5 }
  0xd9   :  { %869 = vmatprep.mubr.msk.bf16.mxu0 %vm868_vm6, %v1118_v53  ;;  %vm309_vm6 = vcmp.eq.s32.totalorder %v1264_v50, %v279_v19 }
  0xda   :  { %v291_v26 = vpop.permute.xlu0 %290 }
  0xdb   :  { %v77_v10 = vpop.permute.xlu1 %76 }
  0xdc   :  { %vm103_vm7 = vcmp.eq.s32.totalorder %v1264_v50, %v77_v10 }
  0xde   :  { %v300_v28 = vpop.permute.xlu0 %299 }
  0xdf   :  { %v80_v12 = vpop.permute.xlu1 %79 }
  0xe0   :  { %vm104_vm8 = vcmp.eq.s32.totalorder %v1264_v50, %v80_v12 }
  0xe1   :  { %vm870_vm9 = vmpackc.low %vm104_vm8, %vm103_vm7 }
  0xe2   :  { %871 = vmatmul.mubr.msk.bf16.gmra.mrb[20].mxu0 %vm870_vm9, %v1118_v53  ;;  %vm312_vm9 = vcmp.eq.s32.totalorder %v1264_v50, %v288_v21 }
  0xe4   :  { %v270_v13 = vpop.permute.xlu1 %269 }
  0xe5   :  { %vm306_vm11 = vcmp.eq.s32.totalorder %v1264_v50, %v270_v13 }
  0xe6   :  { %vm884_vm12 = vmpackc.low %vm306_vm11, %vm305_vm10 }
  0xe7   :  { %996 = vmatprep.mubr.msk.bf16.mxu1 %vm884_vm12, %v1118_v53  ;;  %vm212_vm12 = vcmp.eq.s32.totalorder %v1264_v50, %v1292_v2 }
  0xe8   :  { %v273_v15 = vpop.permute.xlu1 %272 }
  0xe9   :  { %vm307_vm14 = vcmp.eq.s32.totalorder %v1264_v50, %v273_v15 }
  0xea   :  { %vm886_vm15 = vmpackc.low %vm308_vm13, %vm307_vm14 }
  0xeb   :  { %997 = vmatmul.mubr.msk.bf16.gmra.mrb[4].mxu1 %vm886_vm15, %v1118_v53 }
  0xed   :  { %v187_v16 = vpop.permute.xlu1 %186 }
  0xee   :  { %vm209_vm1 = vcmp.eq.s32.totalorder %v1264_v50, %v187_v16 }
  0xef   :  { %vm872_vm2 = vmpackc.low %vm210_vm0, %vm209_vm1 }
  0xf0   :  { %873 = vmatprep.mubr.msk.bf16.mxu0 %vm872_vm2, %v1118_v53  ;;  %vm313_vm2 = vcmp.eq.s32.totalorder %v1264_v50, %v291_v26 }
  0xf2   :  { %v83_v17 = vpop.permute.xlu1 %82 }
  0xf3   :  { %vm105_vm3 = vcmp.eq.s32.totalorder %v1264_v50, %v83_v17 }
  0xf6   :  { %v86_v18 = vpop.permute.xlu1 %85 }
  0xf7   :  { %vm106_vm4 = vcmp.eq.s32.totalorder %v1264_v50, %v86_v18 }
  0xf8   :  { %vm874_vm5 = vmpackc.low %vm106_vm4, %vm105_vm3 }
  0xf9   :  { %875 = vmatmul.mubr.msk.bf16.gmra.mrb[24].mxu0 %vm874_vm5, %v1118_v53  ;;  %vm316_vm5 = vcmp.eq.s32.totalorder %v1264_v50, %v300_v28 }
  0xfb   :  { %v282_v20 = vpop.permute.xlu1 %281 }
  0xfc   :  { %vm310_vm7 = vcmp.eq.s32.totalorder %v1264_v50, %v282_v20 }
  0xfd   :  { %vm888_vm8 = vmpackc.low %vm310_vm7, %vm309_vm6 }
  0xfe   :  { %1000 = vmatprep.mubr.msk.bf16.mxu1 %vm888_vm8, %v1118_v53 }
  0xff   :  { %v285_v22 = vpop.permute.xlu1 %284 }
 0x100   :  { %vm311_vm10 = vcmp.eq.s32.totalorder %v1264_v50, %v285_v22 }
 0x101   :  { %vm890_vm11 = vmpackc.low %vm312_vm9, %vm311_vm10 }
 0x102   :  { %1001 = vmatmul.mubr.msk.bf16.gmra.mrb[8].mxu1 %vm890_vm11, %v1118_v53 }
 0x104   :  { %v193_v23 = vpop.permute.xlu1 %192 }
 0x105   :  { %vm211_vm13 = vcmp.eq.s32.totalorder %v1264_v50, %v193_v23 }
 0x106   :  { %vm876_vm14 = vmpackc.low %vm212_vm12, %vm211_vm13 }
 0x107   :  { %877 = vmatprep.mubr.msk.bf16.mxu0 %vm876_vm14, %v1118_v53 }
 0x109   :  { %v89_v24 = vpop.permute.xlu1 %88 }
 0x10a   :  { %vm107_vm15 = vcmp.eq.s32.totalorder %v1264_v50, %v89_v24 }
 0x10d   :  { %v92_v25 = vpop.permute.xlu1 %91 }
 0x10e   :  { %vm108_vm0 = vcmp.eq.s32.totalorder %v1264_v50, %v92_v25 }
 0x10f   :  { %vm878_vm1 = vmpackc.low %vm108_vm0, %vm107_vm15 }
 0x110   :  { %879 = vmatmul.mubr.msk.bf16.gmra.mrb[28].mxu0 %vm878_vm1, %v1118_v53 }
 0x112   :  { %v294_v27 = vpop.permute.xlu1 %293 }
 0x113   :  { %vm314_vm3 = vcmp.eq.s32.totalorder %v1264_v50, %v294_v27 }
 0x114   :  { %vm892_vm4 = vmpackc.low %vm314_vm3, %vm313_vm2 }
 0x115   :  { %1004 = vmatprep.mubr.msk.bf16.mxu1 %vm892_vm4, %v1118_v53 }
 0x116   :  { %v297_v29 = vpop.permute.xlu1 %296 }
 0x117   :  { %vm315_vm6 = vcmp.eq.s32.totalorder %v1264_v50, %v297_v29 }
 0x118   :  { %vm894_vm7 = vmpackc.low %vm316_vm5, %vm315_vm6 }
 0x119   :  { %1005 = vmatmul.mubr.msk.bf16.gmra.mrb[12].mxu1 %vm894_vm7, %v1118_v53 }
 0x178   :  { %v912_v30 = vpop.f32.mrb[0].mxu0 }
 0x179   :  { %v913_v31 = vpop.f32.mrb[1].mxu0 }
 0x17a   :  { %v914_v32 = vadd.f32 %v913_v31, %v912_v30  ;;  %v915_v33 = vpop.f32.mrb[2].mxu0 }
 0x17b   :  { %v916_v34 = vpop.f32.mrb[3].mxu0 }
 0x17c   :  { %v917_v35 = vadd.f32 %v916_v34, %v915_v33 }
 0x180   :  { %v918_v36 = vpop.f32.mrb[4].mxu0 }
 0x181   :  { %v919_v37 = vpop.f32.mrb[5].mxu0 }
 0x182   :  { %v920_v38 = vadd.f32 %v919_v37, %v918_v36  ;;  %v921_v39 = vpop.f32.mrb[6].mxu0 }
 0x183   :  { %v922_v40 = vpop.f32.mrb[7].mxu0 }
 0x184   :  { %v923_v41 = vadd.f32 %v922_v40, %v921_v39 }
 0x188   :  { %v924_v42 = vpop.f32.mrb[8].mxu0 }
 0x189   :  { %v925_v43 = vpop.f32.mrb[9].mxu0 }
 0x18a   :  { %v926_v44 = vadd.f32 %v925_v43, %v924_v42  ;;  %v927_v45 = vpop.f32.mrb[10].mxu0 }
 0x18b   :  { %v928_v46 = vpop.f32.mrb[11].mxu0 }
 0x18c   :  { %v929_v47 = vadd.f32 %v928_v46, %v927_v45 }
 0x190   :  { %v930_v48 = vpop.f32.mrb[12].mxu0 }
 0x191   :  { %v931_v49 = vpop.f32.mrb[13].mxu0 }
 0x192   :  { %v932_v50 = vadd.f32 %v931_v49, %v930_v48  ;;  %v933_v51 = vpop.f32.mrb[14].mxu0 }
 0x193   :  { %v934_v52 = vpop.f32.mrb[15].mxu0 }
 0x194   :  { %v935_v53 = vadd.f32 %v934_v52, %v933_v51 }
 0x19e   :  { %v936_v54 = vpop.f32.mrb[16].mxu0 }
 0x19f   :  { %v937_v55 = vpop.f32.mrb[17].mxu0 }
 0x1a0   :  { %v938_v56 = vadd.f32 %v937_v55, %v936_v54  ;;  %v939_v57 = vpop.f32.mrb[18].mxu0 }
 0x1a1   :  { %v940_v58 = vpop.f32.mrb[19].mxu0 }
 0x1a2   :  { %v941_v59 = vadd.f32 %v940_v58, %v939_v57 }
 0x1a7   :  { %v994_v60 = vpop.f32.mrb[0].mxu1 }
 0x1a8   :  { %v689_v61 = vadd.f32 %v994_v60, %v920_v38  ;;  %v680_v62 = vpop.f32.mrb[1].mxu1 }
 0x1a9   :  { %v681_v63 = vadd.f32 %v914_v32, %v680_v62  ;;  %v995_v0 = vpop.f32.mrb[2].mxu1 }
 0x1aa   :  { %745 = vst [vmem:[#allocation5 + $0x10] sm:$0xff] %v689_v61  ;;  %v692_v1 = vadd.f32 %v995_v0, %v923_v41  ;;  %v683_v2 = vpop.f32.mrb[3].mxu1 }
 0x1ab   :  { %743 = vst [vmem:[#allocation5] sm:$0xff] %v681_v63  ;;  %v684_v3 = vadd.f32 %v917_v35, %v683_v2 }
 0x1ac   :  { %746 = vst [vmem:[#allocation5 + $0x18] sm:$0xff] %v692_v1 }
 0x1ad   :  { %744 = vst [vmem:[#allocation5 + $0x8] sm:$0xff] %v684_v3 }
 0x1b5   :  { %v942_v4 = vpop.f32.mrb[20].mxu0 }
 0x1b6   :  { %v943_v5 = vpop.f32.mrb[21].mxu0 }
 0x1b7   :  { %v944_v6 = vadd.f32 %v943_v5, %v942_v4  ;;  %v945_v7 = vpop.f32.mrb[22].mxu0 }
 0x1b8   :  { %v946_v8 = vpop.f32.mrb[23].mxu0 }
 0x1b9   :  { %v947_v9 = vadd.f32 %v946_v8, %v945_v7 }
 0x1be   :  { %v998_v10 = vpop.f32.mrb[4].mxu1 }
 0x1bf   :  { %v705_v11 = vadd.f32 %v998_v10, %v932_v50  ;;  %v696_v12 = vpop.f32.mrb[5].mxu1 }
 0x1c0   :  { %v697_v13 = vadd.f32 %v926_v44, %v696_v12  ;;  %v999_v14 = vpop.f32.mrb[6].mxu1 }
 0x1c1   :  { %749 = vst [vmem:[#allocation5 + $0x30] sm:$0xff] %v705_v11  ;;  %v708_v15 = vadd.f32 %v999_v14, %v935_v53  ;;  %v699_v16 = vpop.f32.mrb[7].mxu1 }
 0x1c2   :  { %747 = vst [vmem:[#allocation5 + $0x20] sm:$0xff] %v697_v13  ;;  %v700_v17 = vadd.f32 %v929_v47, %v699_v16 }
 0x1c3   :  { %750 = vst [vmem:[#allocation5 + $0x38] sm:$0xff] %v708_v15 }
 0x1c4   :  { %748 = vst [vmem:[#allocation5 + $0x28] sm:$0xff] %v700_v17 }
 0x1cc   :  { %v948_v18 = vpop.f32.mrb[24].mxu0 }
 0x1cd   :  { %v949_v19 = vpop.f32.mrb[25].mxu0 }
 0x1ce   :  { %v950_v20 = vadd.f32 %v949_v19, %v948_v18  ;;  %v951_v21 = vpop.f32.mrb[26].mxu0 }
 0x1cf   :  { %v952_v22 = vpop.f32.mrb[27].mxu0 }
 0x1d0   :  { %v953_v23 = vadd.f32 %v952_v22, %v951_v21 }
 0x1d5   :  { %v1002_v24 = vpop.f32.mrb[8].mxu1 }
 0x1d6   :  { %v721_v25 = vadd.f32 %v1002_v24, %v944_v6  ;;  %v712_v26 = vpop.f32.mrb[9].mxu1 }
 0x1d7   :  { %v713_v27 = vadd.f32 %v938_v56, %v712_v26  ;;  %v1003_v28 = vpop.f32.mrb[10].mxu1 }
 0x1d8   :  { %753 = vst [vmem:[#allocation5 + $0x50] sm:$0xff] %v721_v25  ;;  %v724_v29 = vadd.f32 %v1003_v28, %v947_v9  ;;  %v715_v30 = vpop.f32.mrb[11].mxu1 }
 0x1d9   :  { %751 = vst [vmem:[#allocation5 + $0x40] sm:$0xff] %v713_v27  ;;  %v716_v31 = vadd.f32 %v941_v59, %v715_v30 }
 0x1da   :  { %754 = vst [vmem:[#allocation5 + $0x58] sm:$0xff] %v724_v29 }
 0x1db   :  { %752 = vst [vmem:[#allocation5 + $0x48] sm:$0xff] %v716_v31 }
 0x1e3   :  { %v954_v32 = vpop.f32.mrb[28].mxu0 }
 0x1e4   :  { %v955_v33 = vpop.f32.mrb[29].mxu0 }
 0x1e5   :  { %v956_v34 = vadd.f32 %v955_v33, %v954_v32  ;;  %v957_v35 = vpop.f32.mrb[30].mxu0 }
 0x1e6   :  { %v958_v36 = vpop.f32.mrb[31].mxu0 }
 0x1e7   :  { %v959_v37 = vadd.f32 %v958_v36, %v957_v35 }
 0x1ec   :  { %v1006_v38 = vpop.f32.mrb[12].mxu1 }
 0x1ed   :  { %v737_v39 = vadd.f32 %v1006_v38, %v956_v34  ;;  %v728_v40 = vpop.f32.mrb[13].mxu1 }
 0x1ee   :  { %v729_v41 = vadd.f32 %v950_v20, %v728_v40  ;;  %v1007_v42 = vpop.f32.mrb[14].mxu1 }
 0x1ef   :  { %757 = vst [vmem:[#allocation5 + $0x70] sm:$0xff] %v737_v39  ;;  %v740_v43 = vadd.f32 %v1007_v42, %v959_v37  ;;  %v731_v44 = vpop.f32.mrb[15].mxu1 }
 0x1f0   :  { %755 = vst [vmem:[#allocation5 + $0x60] sm:$0xff] %v729_v41  ;;  %v732_v45 = vadd.f32 %v953_v23, %v731_v44 }
 0x1f1   :  { %758 = vst [vmem:[#allocation5 + $0x78] sm:$0xff] %v740_v43 }
 0x1f2   :  { %756 = vst [vmem:[#allocation5 + $0x68] sm:$0xff] %v732_v45 }
 0x1f3   :  { %1097 = shalt.err (!%p1094_p12)
}
 0x1f4   :  { %s1098_s29 = scalar_lea.hbm %s1355_s2, 2048 }
 0x1f5   :  { %p1099_p13 = scmp.ne.s32.totalorder %s1355_s2, %s1098_s29  ;;  %p1102_p0 = scmp.lt.u32.totalorder %s1098_s29, %s1355_s2 }
 0x1f7   :  { %p1104_p1 = pnand %p1102_p0, %p1099_p13 }
 0x1f9   :  { %1107 = shalt.err (!%p1104_p1)
}
 0x1fa   :  { %s1120_s6 = smov 128   ;;  %s1121_s7 = smov 8  }
 0x1fb   :  { %770 = dma.vmem_to_hbm [thread:$0]  %s765_s26, 2048, %s1355_s2, [#allocation4], %s1120_s6, %s1120_s6, %s1121_s7  }
 0x1fc   :  { %1110 = dma.done.wait [#allocation4], 2048  }
 0x1fd   :  { %1111 = vsyncadd [#allocation4], 4294965248 }
 0x1fe   :  { %774 = vsyncpa [#allocation3], 1 }
 0x1ff   :  { %775 = vsyncpa [#allocation4], 1 }

// kernel: tpu_custom_call.1
= control target key start
LH: loop header
LB: loop body
LE: loop exit
PB: predicated region body
PF: predicated region fallthrough
CT: control target
= control target key end

     0   :  { %7 = vsyncpa [#allocation3], 0  ;;  %s1353_s0 = inlined_call_operand.vmem [shape: s32[128,3], index: 0, kind: input, shape index: {}]   ;;  %s1354_s1 = inlined_call_operand.hbm [shape: bf16[384,128], index: 1, kind: input, shape index: {}]   ;;  %s1355_s2 = inlined_call_operand.hbm [shape: f32[128,128], index: 2, kind: output, shape index: {}]  }
   0x1   :  { %8 = vsyncpa [#allocation4], 0  ;;  %s1112_s9 = smov [#allocation2]   ;;  %s1064_s13 = scalar_lea.hbm %s1354_s1, 3072 }
   0x2   :  { %s16_s10 = sshll.u32 %s1112_s9, 4  ;;  %p1065_p0 = scmp.ne.s32.totalorder %s1354_s1, %s1064_s13  ;;  %s17_s10 = int_to_ptr.vmem [resolvable:$true] %s16_s10 }
   0x3   :  { %p1068_p1 = scmp.lt.u32.totalorder %s1064_s13, %s1354_s1 }
   0x5   :  { %p1070_p2 = pnand %p1068_p1, %p1065_p0 }
   0x7   :  { %1073 = shalt.err (!%p1070_p2)
}
   0x8   :  { %s1074_s18 = scalar_lea.vmem %s17_s10, 3072  ;;  %p1079_p4 = scmp.lt.s32.totalorder %s17_s10, %s17_s10 }
   0x9   :  { %p1075_p3 = scmp.ne.s32.totalorder %s17_s10, %s1074_s18  ;;  %p1080_p5 = scmp.lt.s32.totalorder %s1074_s18, %s1074_s18 }
   0xb   :  { %p1081_p6 = por %p1080_p5, %p1079_p4 }
   0xd   :  { %p1082_p7 = pnand %p1081_p6, %p1075_p3 }
   0xf   :  { %1085 = shalt.err (!%p1082_p7)
}
  0x10   :  { %s1113_s19 = smov 64   ;;  %s1114_s20 = smov 4  }
  0x11   :  { %22 = dma.hbm_to_vmem [thread:$0]  %s1354_s1, 3072, %s17_s10, [#allocation3], %s1113_s19, %s1113_s19, %s1114_s20  }
  0x12   :  { %1108 = dma.done.wait [#allocation3], 3072  }
  0x13   :  { %1109 = vsyncadd [#allocation3], 4294964224  ;;  %v1115_v0 = vmov 0   ;;  %v1154_v1 = vld [vmem:[%s1353_s0 + $0x10] sm:$0xff]  ;;  %v1159_v2 = vld [vmem:[%s1353_s0] sm:$0xff]  ;;  %v1116_v9 = vmov 1   ;;  %v43_v47 = vlaneseq }
  0x14   :  { %1020 = vset.pattern.permute.xlu0 %v1115_v0  ;;  %1018 = vset.pattern.permute.xlu1 %v1115_v0  ;;  %v1166_v3 = vld [vmem:[%s1353_s0 + $0x30] sm:$0xff]  ;;  %v1171_v4 = vld [vmem:[%s1353_s0 + $0x8] sm:$0xff]  ;;  %v1040_v5 = vld [vmem:[#allocation2 + $0x40] sm:$0xff]   ;;  %v1117_v35 = vmov 2   ;;  %v1118_v53 = vmov 1.0|1.0  }
  0x15   :  { %52 = vperm.xlu0 %1020, %v1154_v1   ;;  %46 = vperm.xlu1 %1018, %v1159_v2   ;;  %v1178_v6 = vld [vmem:[%s1353_s0 + $0x18] sm:$0xff]  ;;  %v1041_v7 = vld [vmem:[#allocation2] sm:$0xff]   ;;  %v1042_v8 = vld [vmem:[#allocation2 + $0x48] sm:$0xff]   ;;  %v1264_v50 = vand.u32 127, %v43_v47 }
  0x16   :  { %896 = vmatprep.subr.bf16.mxu0 %v1040_v5  ;;  %v1043_v10 = vld [vmem:[#allocation2 + $0x8] sm:$0xff]   ;;  %v1044_v11 = vld [vmem:[#allocation2 + $0x50] sm:$0xff]   ;;  %v1046_v13 = vld [vmem:[#allocation2 + $0x58] sm:$0xff]  }
  0x17   :  { %897 = vmatpush3.bf16.msra.mxu0 %v1041_v7  ;;  %v1045_v12 = vld [vmem:[#allocation2 + $0x10] sm:$0xff]   ;;  %v1190_v14 = vld [vmem:[%s1353_s0 + $0x20] sm:$0xff]  ;;  %v1196_v15 = vld [vmem:[%s1353_s0 + $0x28] sm:$0xff] }
  0x18   :  { %898 = vmatprep.subr.bf16.mxu0 %v1042_v8  ;;  %v1047_v16 = vld [vmem:[#allocation2 + $0x18] sm:$0xff]   ;;  %v1048_v17 = vld [vmem:[#allocation2 + $0x60] sm:$0xff]   ;;  %v1050_v19 = vld [vmem:[#allocation2 + $0x68] sm:$0xff]  }
  0x19   :  { %64 = vperm.xlu0 %1020, %v1166_v3   ;;  %49 = vperm.xlu1 %1018, %v1171_v4   ;;  %v1049_v18 = vld [vmem:[#allocation2 + $0x20] sm:$0xff]   ;;  %v1207_v20 = vld [vmem:[%s1353_s0 + $0x48] sm:$0xff]  ;;  %v1052_v22 = vld [vmem:[#allocation2 + $0x70] sm:$0xff]  }
  0x1a   :  { %v1051_v21 = vld [vmem:[#allocation2 + $0x28] sm:$0xff]   ;;  %v1056_v23 = vld [vmem:[#allocation2 + $0x80] sm:$0xff]   ;;  %v34_v24 = vld [vmem:[%s1353_s0 + $0x38] sm:$0xff] }
  0x1b   :  { %899 = vmatpush3.bf16.msra.mxu0 %v1043_v10  ;;  %v1217_v25 = vld [vmem:[%s1353_s0 + $0x58] sm:$0xff]  ;;  %v1053_v26 = vld [vmem:[#allocation2 + $0x30] sm:$0xff]   ;;  %976 = vmatprep.subr.bf16.mxu1 %v1056_v23  ;;  %v1057_v28 = vld [vmem:[#allocation2 + $0x88] sm:$0xff]  }
  0x1c   :  { %900 = vmatprep.subr.bf16.mxu0 %v1044_v11  ;;  %v1054_v27 = vld [vmem:[#allocation2 + $0x78] sm:$0xff]   ;;  %977 = vmatpush3.bf16.msra.mxu1 %v1056_v23  ;;  %v1224_v29 = vld [vmem:[%s1353_s0 + $0x68] sm:$0xff]  ;;  %v1058_v31 = vld [vmem:[#allocation2 + $0x90] sm:$0xff]  }
  0x1d   :  { %1025 = vset.pattern.permute.xlu0 %v1116_v9  ;;  %1019 = vset.pattern.permute.xlu1 %v1116_v9  ;;  %v1055_v30 = vld [vmem:[#allocation2 + $0x38] sm:$0xff]   ;;  %v35_v33 = vld [vmem:[%s1353_s0 + $0x40] sm:$0xff]  ;;  %v1061_v37 = vld [vmem:[#allocation2 + $0xa8] sm:$0xff]  }
  0x1e   :  { %150 = vperm.xlu0 %1025, %v1159_v2   ;;  %159 = vperm.xlu1 %1019, %v1178_v6   ;;  %v42_v32 = vld [vmem:[%s1353_s0 + $0x78] sm:$0xff]  ;;  %v1060_v36 = vld [vmem:[#allocation2 + $0xa0] sm:$0xff]   ;;  %v1062_v38 = vld [vmem:[#allocation2 + $0xb0] sm:$0xff]  }
  0x1f   :  { %901 = vmatpush3.bf16.msra.mxu0 %v1045_v12  ;;  %978 = vmatprep.subr.bf16.mxu1 %v1057_v28  ;;  %v1059_v34 = vld [vmem:[#allocation2 + $0x98] sm:$0xff]   ;;  %v37_v40 = vld [vmem:[%s1353_s0 + $0x50] sm:$0xff]  ;;  %v39_v41 = vld [vmem:[%s1353_s0 + $0x60] sm:$0xff] }
  0x20   :  { %902 = vmatprep.subr.bf16.mxu0 %v1046_v13  ;;  %979 = vmatpush3.bf16.msra.mxu1 %v1057_v28  ;;  %v1063_v39 = vld [vmem:[#allocation2 + $0xb8] sm:$0xff]   ;;  %v41_v42 = vld [vmem:[%s1353_s0 + $0x70] sm:$0xff]  ;;  %s1119_s0 = smov [#allocation5]  }
  0x21   :  { %980 = vmatprep.subr.bf16.mxu1 %v1058_v31  ;;  %s764_s26 = sshll.u32 %s1119_s0, 4  ;;  %s765_s26 = int_to_ptr.vmem [resolvable:$true] %s764_s26 }
  0x22   :  { %153 = vperm.xlu0 %1025, %v1171_v4   ;;  %1021 = vset.pattern.permute.xlu1 %v1115_v0  ;;  %s1086_s1 = scalar_lea.vmem %s765_s26, 2048  ;;  %p1091_p9 = scmp.lt.s32.totalorder %s765_s26, %s765_s26 }
  0x23   :  { %55 = vperm.xlu1 %1021, %v1178_v6   ;;  %903 = vmatpush3.bf16.msra.mxu0 %v1047_v16  ;;  %p1087_p8 = scmp.ne.s32.totalorder %s765_s26, %s1086_s1  ;;  %p1092_p10 = scmp.lt.s32.totalorder %s1086_s1, %s1086_s1 }
  0x24   :  { %904 = vmatprep.subr.bf16.mxu0 %v1048_v17  ;;  %981 = vmatpush3.bf16.msra.mxu1 %v1058_v31 }
  0x25   :  { %982 = vmatprep.subr.bf16.mxu1 %v1059_v34  ;;  %p1093_p11 = por %p1092_p10, %p1091_p9 }
  0x26   :  { %156 = vperm.xlu0 %1025, %v1154_v1  }
  0x27   :  { %1022 = vset.pattern.permute.xlu1 %v1116_v9  ;;  %905 = vmatpush3.bf16.msra.mxu0 %v1049_v18  ;;  %p1094_p12 = pnand %p1093_p11, %p1087_p8 }
  0x28   :  { %162 = vperm.xlu1 %1022, %v1190_v14   ;;  %906 = vmatprep.subr.bf16.mxu0 %v1050_v19 }
  0x29   :  { %983 = vmatpush3.bf16.msra.mxu1 %v1059_v34 }
  0x2a   :  { %165 = vperm.xlu0 %1025, %v1196_v15   ;;  %984 = vmatprep.subr.bf16.mxu1 %v1060_v36 }
  0x2b   :  { %907 = vmatpush3.bf16.msra.mxu0 %v1051_v21 }
  0x2c   :  { %1023 = vset.pattern.permute.xlu1 %v1115_v0  ;;  %908 = vmatprep.subr.bf16.mxu0 %v1052_v22 }
  0x2d   :  { %58 = vperm.xlu1 %1023, %v1190_v14   ;;  %985 = vmatpush3.bf16.msra.mxu1 %v1060_v36 }
  0x2e   :  { %168 = vperm.xlu0 %1025, %v1166_v3   ;;  %986 = vmatprep.subr.bf16.mxu1 %v1061_v37 }
  0x2f   :  { %909 = vmatpush3.bf16.msra.mxu0 %v1053_v26 }
  0x30   :  { %910 = vmatprep.subr.bf16.mxu0 %v1054_v27 }
  0x31   :  { %61 = vperm.xlu1 %1023, %v1196_v15   ;;  %987 = vmatpush3.bf16.msra.mxu1 %v1061_v37 }
  0x32   :  { %177 = vperm.xlu0 %1025, %v1207_v20   ;;  %988 = vmatprep.subr.bf16.mxu1 %v1062_v38 }
  0x33   :  { %911 = vmatpush3.bf16.msra.mxu0 %v1055_v30 }
  0x35   :  { %1024 = vset.pattern.permute.xlu1 %v1116_v9  ;;  %989 = vmatpush3.bf16.msra.mxu1 %v1062_v38 }
  0x36   :  { %171 = vperm.xlu1 %1024, %v34_v24   ;;  %183 = vperm.xlu0 %1025, %v1217_v25  }
  0x37   :  { %990 = vmatprep.subr.bf16.mxu1 %v1063_v39 }
  0x39   :  { %991 = vmatpush3.bf16.msra.mxu1 %v1063_v39 }
  0x3a   :  { %1026 = vset.pattern.permute.xlu1 %v1115_v0  ;;  %189 = vperm.xlu0 %1025, %v1224_v29  }
  0x3b   :  { %67 = vperm.xlu1 %1026, %v34_v24  }
  0x3e   :  { %195 = vperm.xlu0 %1025, %v42_v32  }
  0x3f   :  { %1027 = vset.pattern.permute.xlu1 %v1116_v9 }
  0x40   :  { %174 = vperm.xlu1 %1027, %v35_v33  }
  0x42   :  { %1037 = vset.pattern.permute.xlu0 %v1117_v35 }
  0x43   :  { %254 = vperm.xlu0 %1037, %v1159_v2  }
  0x44   :  { %1028 = vset.pattern.permute.xlu1 %v1115_v0 }
  0x45   :  { %70 = vperm.xlu1 %1028, %v35_v33  }
  0x47   :  { %263 = vperm.xlu0 %1037, %v1178_v6  }
  0x49   :  { %73 = vperm.xlu1 %1028, %v1207_v20  }
  0x4b   :  { %266 = vperm.xlu0 %1037, %v1190_v14  }
  0x4d   :  { %1029 = vset.pattern.permute.xlu1 %v1117_v35 }
  0x4e   :  { %257 = vperm.xlu1 %1029, %v1171_v4  }
  0x4f   :  { %275 = vperm.xlu0 %1037, %v34_v24  }
  0x52   :  { %260 = vperm.xlu1 %1029, %v1154_v1  }
  0x53   :  { %278 = vperm.xlu0 %1037, %v35_v33  }
  0x56   :  { %1030 = vset.pattern.permute.xlu1 %v1116_v9 }
  0x57   :  { %180 = vperm.xlu1 %1030, %v37_v40   ;;  %287 = vperm.xlu0 %1037, %v1217_v25  }
  0x5b   :  { %1031 = vset.pattern.permute.xlu1 %v1115_v0  ;;  %290 = vperm.xlu0 %1037, %v39_v41  }
  0x5c   :  { %76 = vperm.xlu1 %1031, %v37_v40  }
  0x5f   :  { %299 = vperm.xlu0 %1037, %v42_v32  }
  0x60   :  { %79 = vperm.xlu1 %1031, %v1217_v25  }
  0x64   :  { %1032 = vset.pattern.permute.xlu1 %v1117_v35 }
  0x65   :  { %269 = vperm.xlu1 %1032, %v1196_v15  }
  0x69   :  { %272 = vperm.xlu1 %1032, %v1166_v3  }
  0x6d   :  { %1033 = vset.pattern.permute.xlu1 %v1116_v9 }
  0x6e   :  { %186 = vperm.xlu1 %1033, %v39_v41  }
  0x72   :  { %1034 = vset.pattern.permute.xlu1 %v1115_v0 }
  0x73   :  { %82 = vperm.xlu1 %1034, %v39_v41  }
  0x77   :  { %85 = vperm.xlu1 %1034, %v1224_v29  }
  0x7b   :  { %1035 = vset.pattern.permute.xlu1 %v1117_v35 }
  0x7c   :  { %281 = vperm.xlu1 %1035, %v1207_v20  }
  0x80   :  { %284 = vperm.xlu1 %1035, %v37_v40  }
  0x84   :  { %1036 = vset.pattern.permute.xlu1 %v1116_v9 }
  0x85   :  { %192 = vperm.xlu1 %1036, %v41_v42  }
  0x89   :  { %1038 = vset.pattern.permute.xlu1 %v1115_v0 }
  0x8a   :  { %88 = vperm.xlu1 %1038, %v41_v42  }
  0x8e   :  { %91 = vperm.xlu1 %1038, %v42_v32  }
  0x92   :  { %1039 = vset.pattern.permute.xlu1 %v1117_v35 }
  0x93   :  { %293 = vperm.xlu1 %1039, %v1224_v29  }
  0x94   :  { %v47_v43 = vpop.permute.xlu1 %46  ;;  %v53_v44 = vpop.permute.xlu0 %52 }
  0x95   :  { %vm93_vm3 = vcmp.eq.s32.totalorder %v1264_v50, %v47_v43  ;;  %vm95_vm9 = vcmp.eq.s32.totalorder %v1264_v50, %v53_v44 }
  0x97   :  { %296 = vperm.xlu1 %1039, %v41_v42  }
  0x98   :  { %v50_v45 = vpop.permute.xlu1 %49  ;;  %v65_v46 = vpop.permute.xlu0 %64 }
  0x99   :  { %vm94_vm1 = vcmp.eq.s32.totalorder %v1264_v50, %v50_v45 }
  0x9a   :  { %vm850_vm5 = vmpackc.low %vm94_vm1, %vm93_vm3 }
  0x9d   :  { %v151_v48 = vpop.permute.xlu0 %150  ;;  %v160_v49 = vpop.permute.xlu1 %159 }
  0x9e   :  { %vm197_vm0 = vcmp.eq.s32.totalorder %v1264_v50, %v151_v48  ;;  %vm200_vm6 = vcmp.eq.s32.totalorder %v1264_v50, %v160_v49 }
  0xa1   :  { %v154_v51 = vpop.permute.xlu0 %153 }
  0xa2   :  { %vm198_vm2 = vcmp.eq.s32.totalorder %v1264_v50, %v154_v51  ;;  %v56_v52 = vpop.permute.xlu1 %55 }
  0xa3   :  { %vm848_vm4 = vmpackc.low %vm198_vm2, %vm197_vm0  ;;  %vm96_vm10 = vcmp.eq.s32.totalorder %v1264_v50, %v56_v52 }
  0xa4   :  { %849 = vmatprep.mubr.msk.bf16.mxu0 %vm848_vm4, %v1118_v53  ;;  %vm854_vm12 = vmpackc.low %vm96_vm10, %vm95_vm9 }
  0xa5   :  { %v157_v54 = vpop.permute.xlu0 %156  ;;  %851 = vmatmul.mubr.msk.bf16.vlgmr.msra.gmra.mrb[0].mxu0 %vm850_vm5, %v1118_v53  ;;  %vm99_vm5 = vcmp.eq.s32.totalorder %v1264_v50, %v65_v46 }
  0xa6   :  { %vm199_vm7 = vcmp.eq.s32.totalorder %v1264_v50, %v157_v54 }
  0xa7   :  { %vm852_vm8 = vmpackc.low %vm200_vm6, %vm199_vm7  ;;  %v163_v55 = vpop.permute.xlu1 %162 }
  0xa8   :  { %853 = vmatprep.mubr.msk.bf16.mxu0 %vm852_vm8, %v1118_v53  ;;  %vm201_vm13 = vcmp.eq.s32.totalorder %v1264_v50, %v163_v55 }
  0xa9   :  { %v166_v56 = vpop.permute.xlu0 %165 }
  0xaa   :  { %vm202_vm11 = vcmp.eq.s32.totalorder %v1264_v50, %v166_v56 }
  0xab   :  { %vm856_vm14 = vmpackc.low %vm202_vm11, %vm201_vm13 }
  0xac   :  { %v59_v57 = vpop.permute.xlu1 %58 }
  0xad   :  { %855 = vmatmul.mubr.msk.bf16.gmra.mrb[4].mxu0 %vm854_vm12, %v1118_v53  ;;  %v169_v58 = vpop.permute.xlu0 %168  ;;  %vm97_vm0 = vcmp.eq.s32.totalorder %v1264_v50, %v59_v57 }
  0xae   :  { %857 = vmatprep.mubr.msk.bf16.mxu0 %vm856_vm14, %v1118_v53  ;;  %vm203_vm2 = vcmp.eq.s32.totalorder %v1264_v50, %v169_v58 }
  0xb0   :  { %v62_v59 = vpop.permute.xlu1 %61 }
  0xb1   :  { %vm98_vm15 = vcmp.eq.s32.totalorder %v1264_v50, %v62_v59  ;;  %v178_v60 = vpop.permute.xlu0 %177 }
  0xb2   :  { %vm858_vm1 = vmpackc.low %vm98_vm15, %vm97_vm0  ;;  %vm206_vm8 = vcmp.eq.s32.totalorder %v1264_v50, %v178_v60 }
  0xb5   :  { %859 = vmatmul.mubr.msk.bf16.gmra.mrb[8].mxu0 %vm858_vm1, %v1118_v53  ;;  %v172_v61 = vpop.permute.xlu1 %171  ;;  %v184_v62 = vpop.permute.xlu0 %183 }
  0xb6   :  { %vm204_vm3 = vcmp.eq.s32.totalorder %v1264_v50, %v172_v61 }
  0xb7   :  { %vm860_vm4 = vmpackc.low %vm204_vm3, %vm203_vm2 }
  0xb8   :  { %861 = vmatprep.mubr.msk.bf16.mxu0 %vm860_vm4, %v1118_v53  ;;  %vm208_vm4 = vcmp.eq.s32.totalorder %v1264_v50, %v184_v62 }
  0xb9   :  { %v190_v0 = vpop.permute.xlu0 %189 }
  0xba   :  { %v68_v63 = vpop.permute.xlu1 %67 }
  0xbb   :  { %vm100_vm6 = vcmp.eq.s32.totalorder %v1264_v50, %v68_v63 }
  0xbc   :  { %vm862_vm7 = vmpackc.low %vm100_vm6, %vm99_vm5 }
  0xbd   :  { %863 = vmatmul.mubr.msk.bf16.gmra.mrb[12].mxu0 %vm862_vm7, %v1118_v53  ;;  %v1292_v2 = vpop.permute.xlu0 %195 }
  0xbf   :  { %v175_v1 = vpop.permute.xlu1 %174 }
  0xc0   :  { %vm205_vm9 = vcmp.eq.s32.totalorder %v1264_v50, %v175_v1 }
  0xc1   :  { %vm864_vm10 = vmpackc.low %vm206_vm8, %vm205_vm9 }
  0xc2   :  { %865 = vmatprep.mubr.msk.bf16.mxu0 %vm864_vm10, %v1118_v53  ;;  %v255_v4 = vpop.permute.xlu0 %254 }
  0xc3   :  { %vm301_vm14 = vcmp.eq.s32.totalorder %v1264_v50, %v255_v4 }
  0xc4   :  { %v71_v3 = vpop.permute.xlu1 %70 }
  0xc5   :  { %vm101_vm11 = vcmp.eq.s32.totalorder %v1264_v50, %v71_v3 }
  0xc6   :  { %v264_v7 = vpop.permute.xlu0 %263 }
  0xc7   :  { %vm304_vm1 = vcmp.eq.s32.totalorder %v1264_v50, %v264_v7 }
  0xc8   :  { %v74_v5 = vpop.permute.xlu1 %73 }
  0xc9   :  { %vm102_vm12 = vcmp.eq.s32.totalorder %v1264_v50, %v74_v5 }
  0xca   :  { %vm866_vm13 = vmpackc.low %vm102_vm12, %vm101_vm11  ;;  %v267_v11 = vpop.permute.xlu0 %266 }
  0xcb   :  { %867 = vmatmul.mubr.msk.bf16.gmra.mrb[16].mxu0 %vm866_vm13, %v1118_v53  ;;  %vm305_vm10 = vcmp.eq.s32.totalorder %v1264_v50, %v267_v11 }
  0xcd   :  { %v258_v6 = vpop.permute.xlu1 %257 }
  0xce   :  { %vm302_vm15 = vcmp.eq.s32.totalorder %v1264_v50, %v258_v6  ;;  %v276_v14 = vpop.permute.xlu0 %275 }
  0xcf   :  { %vm880_vm0 = vmpackc.low %vm302_vm15, %vm301_vm14  ;;  %vm308_vm13 = vcmp.eq.s32.totalorder %v1264_v50, %v276_v14 }
  0xd0   :  { %992 = vmatprep.mubr.msk.bf16.mxu1 %vm880_vm0, %v1118_v53  ;;  %vm210_vm0 = vcmp.eq.s32.totalorder %v1264_v50, %v190_v0 }
  0xd1   :  { %v261_v8 = vpop.permute.xlu1 %260 }
  0xd2   :  { %vm303_vm2 = vcmp.eq.s32.totalorder %v1264_v50, %v261_v8  ;;  %v279_v19 = vpop.permute.xlu0 %278 }
  0xd3   :  { %vm882_vm3 = vmpackc.low %vm304_vm1, %vm303_vm2 }
  0xd4   :  { %993 = vmatmul.mubr.msk.bf16.vlgmr.msra.gmra.mrb[0].mxu1 %vm882_vm3, %v1118_v53 }
  0xd6   :  { %v181_v9 = vpop.permute.xlu1 %180  ;;  %v288_v21 = vpop.permute.xlu0 %287 }
  0xd7   :  { %vm207_vm5 = vcmp.eq.s32.totalorder %v1264_v50, %v181_v9 }
  0xd8   :  { %vm868_vm6 = vmpackc.low %vm208_vm4, %vm207_vm5 }
  0xd9   :  { %869 = vmatprep.mubr.msk.bf16.mxu0 %vm868_vm6, %v1118_v53  ;;  %vm309_vm6 = vcmp.eq.s32.totalorder %v1264_v50, %v279_v19 }
  0xda   :  { %v291_v26 = vpop.permute.xlu0 %290 }
  0xdb   :  { %v77_v10 = vpop.permute.xlu1 %76 }
  0xdc   :  { %vm103_vm7 = vcmp.eq.s32.totalorder %v1264_v50, %v77_v10 }
  0xde   :  { %v300_v28 = vpop.permute.xlu0 %299 }
  0xdf   :  { %v80_v12 = vpop.permute.xlu1 %79 }
  0xe0   :  { %vm104_vm8 = vcmp.eq.s32.totalorder %v1264_v50, %v80_v12 }
  0xe1   :  { %vm870_vm9 = vmpackc.low %vm104_vm8, %vm103_vm7 }
  0xe2   :  { %871 = vmatmul.mubr.msk.bf16.gmra.mrb[20].mxu0 %vm870_vm9, %v1118_v53  ;;  %vm312_vm9 = vcmp.eq.s32.totalorder %v1264_v50, %v288_v21 }
  0xe4   :  { %v270_v13 = vpop.permute.xlu1 %269 }
  0xe5   :  { %vm306_vm11 = vcmp.eq.s32.totalorder %v1264_v50, %v270_v13 }
  0xe6   :  { %vm884_vm12 = vmpackc.low %vm306_vm11, %vm305_vm10 }
  0xe7   :  { %996 = vmatprep.mubr.msk.bf16.mxu1 %vm884_vm12, %v1118_v53  ;;  %vm212_vm12 = vcmp.eq.s32.totalorder %v1264_v50, %v1292_v2 }
  0xe8   :  { %v273_v15 = vpop.permute.xlu1 %272 }
  0xe9   :  { %vm307_vm14 = vcmp.eq.s32.totalorder %v1264_v50, %v273_v15 }
  0xea   :  { %vm886_vm15 = vmpackc.low %vm308_vm13, %vm307_vm14 }
  0xeb   :  { %997 = vmatmul.mubr.msk.bf16.gmra.mrb[4].mxu1 %vm886_vm15, %v1118_v53 }
  0xed   :  { %v187_v16 = vpop.permute.xlu1 %186 }
  0xee   :  { %vm209_vm1 = vcmp.eq.s32.totalorder %v1264_v50, %v187_v16 }
  0xef   :  { %vm872_vm2 = vmpackc.low %vm210_vm0, %vm209_vm1 }
  0xf0   :  { %873 = vmatprep.mubr.msk.bf16.mxu0 %vm872_vm2, %v1118_v53  ;;  %vm313_vm2 = vcmp.eq.s32.totalorder %v1264_v50, %v291_v26 }
  0xf2   :  { %v83_v17 = vpop.permute.xlu1 %82 }
  0xf3   :  { %vm105_vm3 = vcmp.eq.s32.totalorder %v1264_v50, %v83_v17 }
  0xf6   :  { %v86_v18 = vpop.permute.xlu1 %85 }
  0xf7   :  { %vm106_vm4 = vcmp.eq.s32.totalorder %v1264_v50, %v86_v18 }
  0xf8   :  { %vm874_vm5 = vmpackc.low %vm106_vm4, %vm105_vm3 }
  0xf9   :  { %875 = vmatmul.mubr.msk.bf16.gmra.mrb[24].mxu0 %vm874_vm5, %v1118_v53  ;;  %vm316_vm5 = vcmp.eq.s32.totalorder %v1264_v50, %v300_v28 }
  0xfb   :  { %v282_v20 = vpop.permute.xlu1 %281 }
  0xfc   :  { %vm310_vm7 = vcmp.eq.s32.totalorder %v1264_v50, %v282_v20 }
  0xfd   :  { %vm888_vm8 = vmpackc.low %vm310_vm7, %vm309_vm6 }
  0xfe   :  { %1000 = vmatprep.mubr.msk.bf16.mxu1 %vm888_vm8, %v1118_v53 }
  0xff   :  { %v285_v22 = vpop.permute.xlu1 %284 }
 0x100   :  { %vm311_vm10 = vcmp.eq.s32.totalorder %v1264_v50, %v285_v22 }
 0x101   :  { %vm890_vm11 = vmpackc.low %vm312_vm9, %vm311_vm10 }
 0x102   :  { %1001 = vmatmul.mubr.msk.bf16.gmra.mrb[8].mxu1 %vm890_vm11, %v1118_v53 }
 0x104   :  { %v193_v23 = vpop.permute.xlu1 %192 }
 0x105   :  { %vm211_vm13 = vcmp.eq.s32.totalorder %v1264_v50, %v193_v23 }
 0x106   :  { %vm876_vm14 = vmpackc.low %vm212_vm12, %vm211_vm13 }
 0x107   :  { %877 = vmatprep.mubr.msk.bf16.mxu0 %vm876_vm14, %v1118_v53 }
 0x109   :  { %v89_v24 = vpop.permute.xlu1 %88 }
 0x10a   :  { %vm107_vm15 = vcmp.eq.s32.totalorder %v1264_v50, %v89_v24 }
 0x10d   :  { %v92_v25 = vpop.permute.xlu1 %91 }
 0x10e   :  { %vm108_vm0 = vcmp.eq.s32.totalorder %v1264_v50, %v92_v25 }
 0x10f   :  { %vm878_vm1 = vmpackc.low %vm108_vm0, %vm107_vm15 }
 0x110   :  { %879 = vmatmul.mubr.msk.bf16.gmra.mrb[28].mxu0 %vm878_vm1, %v1118_v53 }
 0x112   :  { %v294_v27 = vpop.permute.xlu1 %293 }
 0x113   :  { %vm314_vm3 = vcmp.eq.s32.totalorder %v1264_v50, %v294_v27 }
 0x114   :  { %vm892_vm4 = vmpackc.low %vm314_vm3, %vm313_vm2 }
 0x115   :  { %1004 = vmatprep.mubr.msk.bf16.mxu1 %vm892_vm4, %v1118_v53 }
 0x116   :  { %v297_v29 = vpop.permute.xlu1 %296 }
 0x117   :  { %vm315_vm6 = vcmp.eq.s32.totalorder %v1264_v50, %v297_v29 }
 0x118   :  { %vm894_vm7 = vmpackc.low %vm316_vm5, %vm315_vm6 }
 0x119   :  { %1005 = vmatmul.mubr.msk.bf16.gmra.mrb[12].mxu1 %vm894_vm7, %v1118_v53 }
 0x178   :  { %v912_v30 = vpop.f32.mrb[0].mxu0 }
 0x179   :  { %v913_v31 = vpop.f32.mrb[1].mxu0 }
 0x17a   :  { %v914_v32 = vadd.f32 %v913_v31, %v912_v30  ;;  %v915_v33 = vpop.f32.mrb[2].mxu0 }
 0x17b   :  { %v916_v34 = vpop.f32.mrb[3].mxu0 }
 0x17c   :  { %v917_v35 = vadd.f32 %v916_v34, %v915_v33 }
 0x180   :  { %v918_v36 = vpop.f32.mrb[4].mxu0 }
 0x181   :  { %v919_v37 = vpop.f32.mrb[5].mxu0 }
 0x182   :  { %v920_v38 = vadd.f32 %v919_v37, %v918_v36  ;;  %v921_v39 = vpop.f32.mrb[6].mxu0 }
 0x183   :  { %v922_v40 = vpop.f32.mrb[7].mxu0 }
 0x184   :  { %v923_v41 = vadd.f32 %v922_v40, %v921_v39 }
 0x188   :  { %v924_v42 = vpop.f32.mrb[8].mxu0 }
 0x189   :  { %v925_v43 = vpop.f32.mrb[9].mxu0 }
 0x18a   :  { %v926_v44 = vadd.f32 %v925_v43, %v924_v42  ;;  %v927_v45 = vpop.f32.mrb[10].mxu0 }
 0x18b   :  { %v928_v46 = vpop.f32.mrb[11].mxu0 }
 0x18c   :  { %v929_v47 = vadd.f32 %v928_v46, %v927_v45 }
 0x190   :  { %v930_v48 = vpop.f32.mrb[12].mxu0 }
 0x191   :  { %v931_v49 = vpop.f32.mrb[13].mxu0 }
 0x192   :  { %v932_v50 = vadd.f32 %v931_v49, %v930_v48  ;;  %v933_v51 = vpop.f32.mrb[14].mxu0 }
 0x193   :  { %v934_v52 = vpop.f32.mrb[15].mxu0 }
 0x194   :  { %v935_v53 = vadd.f32 %v934_v52, %v933_v51 }
 0x19e   :  { %v936_v54 = vpop.f32.mrb[16].mxu0 }
 0x19f   :  { %v937_v55 = vpop.f32.mrb[17].mxu0 }
 0x1a0   :  { %v938_v56 = vadd.f32 %v937_v55, %v936_v54  ;;  %v939_v57 = vpop.f32.mrb[18].mxu0 }
 0x1a1   :  { %v940_v58 = vpop.f32.mrb[19].mxu0 }
 0x1a2   :  { %v941_v59 = vadd.f32 %v940_v58, %v939_v57 }
 0x1a7   :  { %v994_v60 = vpop.f32.mrb[0].mxu1 }
 0x1a8   :  { %v689_v61 = vadd.f32 %v994_v60, %v920_v38  ;;  %v680_v62 = vpop.f32.mrb[1].mxu1 }
 0x1a9   :  { %v681_v63 = vadd.f32 %v914_v32, %v680_v62  ;;  %v995_v0 = vpop.f32.mrb[2].mxu1 }
 0x1aa   :  { %745 = vst [vmem:[#allocation5 + $0x10] sm:$0xff] %v689_v61  ;;  %v692_v1 = vadd.f32 %v995_v0, %v923_v41  ;;  %v683_v2 = vpop.f32.mrb[3].mxu1 }
 0x1ab   :  { %743 = vst [vmem:[#allocation5] sm:$0xff] %v681_v63  ;;  %v684_v3 = vadd.f32 %v917_v35, %v683_v2 }
 0x1ac   :  { %746 = vst [vmem:[#allocation5 + $0x18] sm:$0xff] %v692_v1 }
 0x1ad   :  { %744 = vst [vmem:[#allocation5 + $0x8] sm:$0xff] %v684_v3 }
 0x1b5   :  { %v942_v4 = vpop.f32.mrb[20].mxu0 }
 0x1b6   :  { %v943_v5 = vpop.f32.mrb[21].mxu0 }
 0x1b7   :  { %v944_v6 = vadd.f32 %v943_v5, %v942_v4  ;;  %v945_v7 = vpop.f32.mrb[22].mxu0 }
 0x1b8   :  { %v946_v8 = vpop.f32.mrb[23].mxu0 }
 0x1b9   :  { %v947_v9 = vadd.f32 %v946_v8, %v945_v7 }
 0x1be   :  { %v998_v10 = vpop.f32.mrb[4].mxu1 }
 0x1bf   :  { %v705_v11 = vadd.f32 %v998_v10, %v932_v50  ;;  %v696_v12 = vpop.f32.mrb[5].mxu1 }
 0x1c0   :  { %v697_v13 = vadd.f32 %v926_v44, %v696_v12  ;;  %v999_v14 = vpop.f32.mrb[6].mxu1 }
 0x1c1   :  { %749 = vst [vmem:[#allocation5 + $0x30] sm:$0xff] %v705_v11  ;;  %v708_v15 = vadd.f32 %v999_v14, %v935_v53  ;;  %v699_v16 = vpop.f32.mrb[7].mxu1 }
 0x1c2   :  { %747 = vst [vmem:[#allocation5 + $0x20] sm:$0xff] %v697_v13  ;;  %v700_v17 = vadd.f32 %v929_v47, %v699_v16 }
 0x1c3   :  { %750 = vst [vmem:[#allocation5 + $0x38] sm:$0xff] %v708_v15 }
 0x1c4   :  { %748 = vst [vmem:[#allocation5 + $0x28] sm:$0xff] %v700_v17 }
 0x1cc   :  { %v948_v18 = vpop.f32.mrb[24].mxu0 }
 0x1cd   :  { %v949_v19 = vpop.f32.mrb[25].mxu0 }
 0x1ce   :  { %v950_v20 = vadd.f32 %v949_v19, %v948_v18  ;;  %v951_v21 = vpop.f32.mrb[26].mxu0 }
 0x1cf   :  { %v952_v22 = vpop.f32.mrb[27].mxu0 }
 0x1d0   :  { %v953_v23 = vadd.f32 %v952_v22, %v951_v21 }
 0x1d5   :  { %v1002_v24 = vpop.f32.mrb[8].mxu1 }
 0x1d6   :  { %v721_v25 = vadd.f32 %v1002_v24, %v944_v6  ;;  %v712_v26 = vpop.f32.mrb[9].mxu1 }
 0x1d7   :  { %v713_v27 = vadd.f32 %v938_v56, %v712_v26  ;;  %v1003_v28 = vpop.f32.mrb[10].mxu1 }
 0x1d8   :  { %753 = vst [vmem:[#allocation5 + $0x50] sm:$0xff] %v721_v25  ;;  %v724_v29 = vadd.f32 %v1003_v28, %v947_v9  ;;  %v715_v30 = vpop.f32.mrb[11].mxu1 }
 0x1d9   :  { %751 = vst [vmem:[#allocation5 + $0x40] sm:$0xff] %v713_v27  ;;  %v716_v31 = vadd.f32 %v941_v59, %v715_v30 }
 0x1da   :  { %754 = vst [vmem:[#allocation5 + $0x58] sm:$0xff] %v724_v29 }
 0x1db   :  { %752 = vst [vmem:[#allocation5 + $0x48] sm:$0xff] %v716_v31 }
 0x1e3   :  { %v954_v32 = vpop.f32.mrb[28].mxu0 }
 0x1e4   :  { %v955_v33 = vpop.f32.mrb[29].mxu0 }
 0x1e5   :  { %v956_v34 = vadd.f32 %v955_v33, %v954_v32  ;;  %v957_v35 = vpop.f32.mrb[30].mxu0 }
 0x1e6   :  { %v958_v36 = vpop.f32.mrb[31].mxu0 }
 0x1e7   :  { %v959_v37 = vadd.f32 %v958_v36, %v957_v35 }
 0x1ec   :  { %v1006_v38 = vpop.f32.mrb[12].mxu1 }
 0x1ed   :  { %v737_v39 = vadd.f32 %v1006_v38, %v956_v34  ;;  %v728_v40 = vpop.f32.mrb[13].mxu1 }
 0x1ee   :  { %v729_v41 = vadd.f32 %v950_v20, %v728_v40  ;;  %v1007_v42 = vpop.f32.mrb[14].mxu1 }
 0x1ef   :  { %757 = vst [vmem:[#allocation5 + $0x70] sm:$0xff] %v737_v39  ;;  %v740_v43 = vadd.f32 %v1007_v42, %v959_v37  ;;  %v731_v44 = vpop.f32.mrb[15].mxu1 }
 0x1f0   :  { %755 = vst [vmem:[#allocation5 + $0x60] sm:$0xff] %v729_v41  ;;  %v732_v45 = vadd.f32 %v953_v23, %v731_v44 }
 0x1f1   :  { %758 = vst [vmem:[#allocation5 + $0x78] sm:$0xff] %v740_v43 }
 0x1f2   :  { %756 = vst [vmem:[#allocation5 + $0x68] sm:$0xff] %v732_v45 }
 0x1f3   :  { %1097 = shalt.err (!%p1094_p12)
}
 0x1f4   :  { %s1098_s29 = scalar_lea.hbm %s1355_s2, 2048 }
 0x1f5   :  { %p1099_p13 = scmp.ne.s32.totalorder %s1355_s2, %s1098_s29  ;;  %p1102_p0 = scmp.lt.u32.totalorder %s1098_s29, %s1355_s2 }
 0x1f7   :  { %p1104_p1 = pnand %p1102_p0, %p1099_p13 }
 0x1f9   :  { %1107 = shalt.err (!%p1104_p1)
}
 0x1fa   :  { %s1120_s6 = smov 128   ;;  %s1121_s7 = smov 8  }
 0x1fb   :  { %770 = dma.vmem_to_hbm [thread:$0]  %s765_s26, 2048, %s1355_s2, [#allocation4], %s1120_s6, %s1120_s6, %s1121_s7  }
 0x1fc   :  { %1110 = dma.done.wait [#allocation4], 2048  }
 0x1fd   :  { %1111 = vsyncadd [#allocation4], 4294965248 }
 0x1fe   :  { %774 = vsyncpa [#allocation3], 1 }
 0x1ff   :  { %775 = vsyncpa [#allocation4], 1 }

</bundles_post_ra>
